<compile_context>
chip_gen: v5e
topology: v5e:2x2
jax: 0.10.0
libtpu: 0.0.40
codegen_flags: <defaults>
</compile_context>

<pallas_src>
import math
from functools import partial

import jax
import jax.numpy as jnp
from jax.experimental import pallas as pl
from jax.experimental.pallas import tpu as pltpu


def _attention_in_kernel(h_ref, ai2_ref,
                         wqkv_ref, bqkv_ref, wp_ref, bp_ref,
                         gamma_ref, beta_ref,
                         o_ref, *, num_heads, head_dim, eps, matmul_dtype):
    Bt, S, Din = h_ref.shape
    D = num_heads * head_dim
    H = num_heads

    x = h_ref[...].reshape(Bt * S, Din)                      # (Bt*S, Din)

    # ---- fused Q/K/V projection: one MXU pass, N = 3D ----
    qkv = jnp.dot(x.astype(matmul_dtype), wqkv_ref[...].astype(matmul_dtype),
                  preferred_element_type=jnp.float32) + bqkv_ref[...]
    scale = 1.0 / math.sqrt(head_dim)
    q = qkv[:, :D] * scale                                   # fold scale into q
    k = qkv[:, D:2 * D]
    v = qkv[:, 2 * D:3 * D]

    # ---- heads to a leading batch axis: (Bt*H, S, dh) ----
    def to_heads(t):
        return t.reshape(Bt, S, H, head_dim).transpose(0, 2, 1, 3).reshape(
            Bt * H, S, head_dim)

    qh = to_heads(q).astype(matmul_dtype)
    kh = to_heads(k).astype(matmul_dtype)
    vh = to_heads(v).astype(matmul_dtype)

    # ---- batched attention (contract last dims; no explicit kh.T) ----
    s = jax.lax.dot_general(qh, kh, (((2,), (2,)), ((0,), (0,))),
                            preferred_element_type=jnp.float32)   # (Bt*H, S, S)
    m = jnp.max(s, axis=-1, keepdims=True)
    e = jnp.exp(s - m)
    l = jnp.sum(e, axis=-1, keepdims=True)                        # (Bt*H, S, 1)

    ctx = jax.lax.dot_general(e.astype(matmul_dtype), vh,
                              (((2,), (1,)), ((0,), (0,))),
                              preferred_element_type=jnp.float32)  # (Bt*H, S, dh)
    # normalize ctx once (dh-wide) instead of the (S, S) probs
    ctx = ctx * pl.reciprocal(l, approx=False)

    # ---- merge heads: (Bt*H, S, dh) -> (Bt*S, D) ----
    ctx = ctx.reshape(Bt, H, S, head_dim).transpose(0, 2, 1, 3).reshape(Bt * S, D)

    # ---- output projection + residual + LayerNorm (f32 elementwise math) ----
    out = jnp.dot(ctx.astype(matmul_dtype), wp_ref[...].astype(matmul_dtype),
                  preferred_element_type=jnp.float32) + bp_ref[...]
    out = out + ai2_ref[...].reshape(Bt * S, D)

    mean = jnp.mean(out, axis=-1, keepdims=True)
    c = out - mean
    var = jnp.mean(c * c, axis=-1, keepdims=True)
    normed = c * jax.lax.rsqrt(var + eps)
    o_ref[...] = (normed * gamma_ref[...] + beta_ref[...]).reshape(Bt, S, D)


def _pick_batch_tile(B, S, Din, D, num_heads):
    """Largest divisor of B that (a) leaves >=2 grid steps when B>1 so both
    v7x TensorCores get work and (b) keeps the per-step VMEM footprint small."""
    per_batch = 4 * (2 * S * Din + 4 * S * D        # x / ai2 / out blocks (dbl-buffered)
                     + 3 * S * D * 2                # qkv + head-layout copies
                     + num_heads * S * S)           # scores
    budget = 8 * 1024 * 1024                        # conservative for 32 MiB scoped VMEM
    cap = max(1, budget // max(per_batch, 1))
    target = max(1, B // 2) if B > 1 else 1
    want = max(1, min(B, cap, target))
    for d in range(want, 0, -1):
        if B % d == 0:
            return d
    return 1


def attention_in(hidden_states, ai2, params, *, num_heads, eps=1e-6,
                 batch_tile=None, matmul_dtype=jnp.float32):
    B, S, Din = hidden_states.shape
    D = params["wq"].shape[1]
    assert D % num_heads == 0
    head_dim = D // num_heads

    # Fuse Q/K/V weights and biases -> one (Din, 3D) matmul operand.
    # NOTE: weights are stored (in, out), i.e. transposed vs. PyTorch Linear.weight.
    wqkv = jnp.concatenate([params["wq"], params["wk"], params["wv"]], axis=1)
    bqkv = jnp.concatenate([params["bq"], params["bk"], params["bv"]], axis=1)

    if batch_tile is None:
        batch_tile = _pick_batch_tile(B, S, Din, D, num_heads)
    assert B % batch_tile == 0
    grid_b = B // batch_tile

    kernel = partial(_attention_in_kernel, num_heads=num_heads,
                     head_dim=head_dim, eps=eps, matmul_dtype=matmul_dtype)

    def wspec(shape):
        # TODO(synk): for large real-model weights under v7x's 64 MiB VMEM, mark
        # these grid-invariant specs single-buffered (pipeline_mode=pl.Buffered(1)).
        return pl.BlockSpec(shape, lambda b: (0, 0))

    in_specs = [
        pl.BlockSpec((batch_tile, S, Din), lambda b: (b, 0, 0)),   # hidden_states
        pl.BlockSpec((batch_tile, S, D), lambda b: (b, 0, 0)),     # ai2 (residual)
        wspec((Din, 3 * D)), wspec((1, 3 * D)),                    # fused QKV W, b
        wspec((D, D)),       wspec((1, D)),                        # proj W, b
        wspec((1, D)),       wspec((1, D)),                        # LayerNorm gamma, beta
    ]
    # NOTE: with D < 128 (demo dmodel=32) the output store is lane-masked; for
    # real ViT configs (D >= 128, multiple of 128) this block is lane-dense.
    out_spec = pl.BlockSpec((batch_tile, S, D), lambda b: (b, 0, 0))

    return pl.pallas_call(
        kernel,
        out_shape=jax.ShapeDtypeStruct((B, S, D), jnp.float32),
        grid_spec=pltpu.PrefetchScalarGridSpec(
            num_scalar_prefetch=0,
            grid=(grid_b,),
            in_specs=in_specs,
            out_specs=out_spec,
        ),
        compiler_params=pltpu.CompilerParams(
            dimension_semantics=("parallel",)),
    )(hidden_states, ai2, wqkv, bqkv,
      params["wp"], params["bp"], params["gamma"], params["beta"])


def _reference(hidden_states, ai2, params, *, num_heads, eps=1e-6):
    """Pure-JAX reference mirroring the PyTorch forward semantics."""
    B, S, Din = hidden_states.shape
    D = params["wq"].shape[1]
    dh = D // num_heads
    q = hidden_states @ params["wq"] + params["bq"]
    k = hidden_states @ params["wk"] + params["bk"]
    v = hidden_states @ params["wv"] + params["bv"]

    def split(x):  # (B,S,D) -> (B,H,S,dh)
        return x.reshape(B, S, num_heads, dh).transpose(0, 2, 1, 3)

    qh, kh, vh = split(q), split(k), split(v)
    scores = jnp.einsum("bhqd,bhkd->bhqk", qh, kh) / math.sqrt(dh)
    probs = jax.nn.softmax(scores, axis=-1)
    ctx = jnp.einsum("bhqk,bhkd->bhqd", probs, vh)
    ctx = ctx.transpose(0, 2, 1, 3).reshape(B, S, D)
    out = ctx @ params["wp"] + params["bp"] + ai2
    mean = jnp.mean(out, axis=-1, keepdims=True)
    var = jnp.mean((out - mean) ** 2, axis=-1, keepdims=True)
    return (out - mean) / jnp.sqrt(var + eps) * params["gamma"] + params["beta"]


if __name__ == "__main__":
    # Small shapes consistent with the module's forward:
    #   inputLenght (input feature dim) = 32, dmodel = 32, num_heads = 8, seq = 8, batch = 2
    B, S, Din, D, H = 2, 8, 32, 32, 8
    eps = 1e-6

    key = jax.random.PRNGKey(0)
    ks = jax.random.split(key, 12)
    scale_in = 1.0 / math.sqrt(Din)
    scale_d = 1.0 / math.sqrt(D)
    params = {
        "wq": jax.random.normal(ks[0], (Din, D), jnp.float32) * scale_in,
        "bq": jax.random.normal(ks[1], (1, D), jnp.float32) * 0.01,
        "wk": jax.random.normal(ks[2], (Din, D), jnp.float32) * scale_in,
        "bk": jax.random.normal(ks[3], (1, D), jnp.float32) * 0.01,
        "wv": jax.random.normal(ks[4], (Din, D), jnp.float32) * scale_in,
        "bv": jax.random.normal(ks[5], (1, D), jnp.float32) * 0.01,
        "wp": jax.random.normal(ks[6], (D, D), jnp.float32) * scale_d,
        "bp": jax.random.normal(ks[7], (1, D), jnp.float32) * 0.01,
        "gamma": 1.0 + 0.1 * jax.random.normal(ks[8], (1, D), jnp.float32),
        "beta": 0.1 * jax.random.normal(ks[9], (1, D), jnp.float32),
    }

    hidden_states = jax.random.normal(ks[10], (B, S, Din), jnp.float32)
    ai2 = jax.random.normal(ks[11], (B, S, D), jnp.float32)

    # f32 matmuls by default (exact module semantics); pass
    # matmul_dtype=jnp.bfloat16 on v6e/v7x for MXU throughput (f32 accumulation).
    out = attention_in(hidden_states, ai2, params, num_heads=H, eps=eps)
    out = jax.block_until_ready(out)

    ref = _reference(hidden_states, ai2, params, num_heads=H, eps=eps)
    assert out.shape == (B, S, D)
    assert jnp.allclose(out, ref, atol=1e-4, rtol=1e-4), "mismatch vs reference"

    print("KERNEL_OK")
</pallas_src>

<mosaic_0001>
module attributes {stable_mosaic.version = 11 : i64} {
  func.func @_attention_in_kernel(%arg0: i32, %arg1: memref<1x8x32xf32, #tpu.memory_space<vmem>>, %arg2: memref<1x8x32xf32, #tpu.memory_space<vmem>>, %arg3: memref<32x96xf32, #tpu.memory_space<vmem>>, %arg4: memref<1x96xf32, #tpu.memory_space<vmem>>, %arg5: memref<32x32xf32, #tpu.memory_space<vmem>>, %arg6: memref<1x32xf32, #tpu.memory_space<vmem>>, %arg7: memref<1x32xf32, #tpu.memory_space<vmem>>, %arg8: memref<1x32xf32, #tpu.memory_space<vmem>>, %arg9: memref<1x8x32xf32, #tpu.memory_space<vmem>>) attributes {dimension_semantics = [#tpu.dimension_semantics<parallel>], iteration_bounds = array<i64: 2>, scalar_prefetch = 0 : i64, scratch_operands = 0 : i64, tpu.core_type = #tpu.core_type<tc>, window_params = [{transform_indices = @transform_0, window_bounds = array<i64: 1, 8, 32>}, {transform_indices = @transform_1, window_bounds = array<i64: 1, 8, 32>}, {pipeline_mode = #tpu.pipeline_mode<synchronous>, transform_indices = @transform_2, window_bounds = array<i64: 32, 96>}, {pipeline_mode = #tpu.pipeline_mode<synchronous>, transform_indices = @transform_3, window_bounds = array<i64: 1, 96>}, {pipeline_mode = #tpu.pipeline_mode<synchronous>, transform_indices = @transform_4, window_bounds = array<i64: 32, 32>}, {pipeline_mode = #tpu.pipeline_mode<synchronous>, transform_indices = @transform_5, window_bounds = array<i64: 1, 32>}, {pipeline_mode = #tpu.pipeline_mode<synchronous>, transform_indices = @transform_6, window_bounds = array<i64: 1, 32>}, {pipeline_mode = #tpu.pipeline_mode<synchronous>, transform_indices = @transform_7, window_bounds = array<i64: 1, 32>}, {transform_indices = @transform_8, window_bounds = array<i64: 1, 8, 32>}]} {
    %c0 = arith.constant 0 : index
    %c0_0 = arith.constant 0 : index
    %c0_1 = arith.constant 0 : index
    %0 = vector.load %arg1[%c0, %c0_0, %c0_1] : memref<1x8x32xf32, #tpu.memory_space<vmem>>, vector<1x8x32xf32>
    %1 = vector.shape_cast %0 : vector<1x8x32xf32> to vector<8x32xf32>
    %c0_2 = arith.constant 0 : index
    %c0_3 = arith.constant 0 : index
    %2 = vector.load %arg3[%c0_2, %c0_3] : memref<32x96xf32, #tpu.memory_space<vmem>>, vector<32x96xf32>
    %cst = arith.constant dense<0.000000e+00> : vector<8x96xf32>
    %3 = tpu.matmul %1, %2, %cst {dimension_numbers = #tpu.dot_dimension_numbers<[1], [0], [0], [1], [0, 0, 1, 1], [], []>} : vector<8x32xf32>, vector<32x96xf32>, vector<8x96xf32> -> vector<8x96xf32>
    %c0_4 = arith.constant 0 : index
    %c0_5 = arith.constant 0 : index
    %4 = vector.load %arg4[%c0_4, %c0_5] : memref<1x96xf32, #tpu.memory_space<vmem>>, vector<1x96xf32>
    %5 = vector.broadcast %4 : vector<1x96xf32> to vector<8x96xf32>
    %6 = arith.addf %3, %5 : vector<8x96xf32>
    %7 = vector.extract_strided_slice %6 {offsets = [0, 0], sizes = [8, 32], strides = [1, 1]} : vector<8x96xf32> to vector<8x32xf32>
    %cst_6 = arith.constant 5.000000e-01 : f32
    %8 = vector.broadcast %cst_6 : f32 to vector<8x32xf32>
    %9 = arith.mulf %7, %8 : vector<8x32xf32>
    %10 = vector.extract_strided_slice %6 {offsets = [0, 32], sizes = [8, 32], strides = [1, 1]} : vector<8x96xf32> to vector<8x32xf32>
    %11 = vector.extract_strided_slice %6 {offsets = [0, 64], sizes = [8, 32], strides = [1, 1]} : vector<8x96xf32> to vector<8x32xf32>
    %12 = vector.shape_cast %9 : vector<8x32xf32> to vector<1x8x8x4xf32>
    %13 = tpu.transpose %12, [0, 2, 1, 3] : vector<1x8x8x4xf32> -> vector<1x8x8x4xf32>
    %14 = vector.shape_cast %13 : vector<1x8x8x4xf32> to vector<8x8x4xf32>
    %15 = vector.shape_cast %10 : vector<8x32xf32> to vector<1x8x8x4xf32>
    %16 = tpu.transpose %15, [0, 2, 1, 3] : vector<1x8x8x4xf32> -> vector<1x8x8x4xf32>
    %17 = vector.shape_cast %16 : vector<1x8x8x4xf32> to vector<8x8x4xf32>
    %18 = vector.shape_cast %11 : vector<8x32xf32> to vector<1x8x8x4xf32>
    %19 = tpu.transpose %18, [0, 2, 1, 3] : vector<1x8x8x4xf32> -> vector<1x8x8x4xf32>
    %20 = vector.shape_cast %19 : vector<1x8x8x4xf32> to vector<8x8x4xf32>
    %cst_7 = arith.constant dense<0.000000e+00> : vector<8x8x8xf32>
    %21 = tpu.matmul %14, %17, %cst_7 {dimension_numbers = #tpu.dot_dimension_numbers<[2], [2], [1], [1], [0, 0, 0, 1, 1, 1], [0], [0]>} : vector<8x8x4xf32>, vector<8x8x4xf32>, vector<8x8x8xf32> -> vector<8x8x8xf32>
    %cst_8 = arith.constant dense<0xFF800000> : vector<8x8xf32>
    %22 = vector.multi_reduction <maximumf>, %21, %cst_8 [2] : vector<8x8x8xf32> to vector<8x8xf32>
    %23 = vector.shape_cast %22 : vector<8x8xf32> to vector<8x8x1xf32>
    %24 = vector.broadcast %23 : vector<8x8x1xf32> to vector<8x8x8xf32>
    %25 = arith.subf %21, %24 : vector<8x8x8xf32>
    %26 = math.exp %25 : vector<8x8x8xf32>
    %cst_9 = arith.constant dense<0.000000e+00> : vector<8x8xf32>
    %27 = vector.multi_reduction <add>, %26, %cst_9 [2] : vector<8x8x8xf32> to vector<8x8xf32>
    %28 = vector.shape_cast %27 : vector<8x8xf32> to vector<8x8x1xf32>
    %cst_10 = arith.constant dense<0.000000e+00> : vector<8x8x4xf32>
    %29 = tpu.matmul %26, %20, %cst_10 {dimension_numbers = #tpu.dot_dimension_numbers<[2], [1], [1], [2], [0, 0, 0, 1, 1, 2], [0], [0]>} : vector<8x8x8xf32>, vector<8x8x4xf32>, vector<8x8x4xf32> -> vector<8x8x4xf32>
    %30 = tpu.reciprocal %28 : vector<8x8x1xf32> -> vector<8x8x1xf32>
    %31 = vector.broadcast %30 : vector<8x8x1xf32> to vector<8x8x4xf32>
    %32 = arith.mulf %29, %31 : vector<8x8x4xf32>
    %33 = vector.shape_cast %32 : vector<8x8x4xf32> to vector<1x8x8x4xf32>
    %34 = tpu.transpose %33, [0, 2, 1, 3] : vector<1x8x8x4xf32> -> vector<1x8x8x4xf32>
    %35 = vector.shape_cast %34 : vector<1x8x8x4xf32> to vector<8x32xf32>
    %c0_11 = arith.constant 0 : index
    %c0_12 = arith.constant 0 : index
    %36 = vector.load %arg5[%c0_11, %c0_12] : memref<32x32xf32, #tpu.memory_space<vmem>>, vector<32x32xf32>
    %cst_13 = arith.constant dense<0.000000e+00> : vector<8x32xf32>
    %37 = tpu.matmul %35, %36, %cst_13 {dimension_numbers = #tpu.dot_dimension_numbers<[1], [0], [0], [1], [0, 0, 1, 1], [], []>} : vector<8x32xf32>, vector<32x32xf32>, vector<8x32xf32> -> vector<8x32xf32>
    %c0_14 = arith.constant 0 : index
    %c0_15 = arith.constant 0 : index
    %38 = vector.load %arg6[%c0_14, %c0_15] : memref<1x32xf32, #tpu.memory_space<vmem>>, vector<1x32xf32>
    %39 = vector.broadcast %38 : vector<1x32xf32> to vector<8x32xf32>
    %40 = arith.addf %37, %39 : vector<8x32xf32>
    %c0_16 = arith.constant 0 : index
    %c0_17 = arith.constant 0 : index
    %c0_18 = arith.constant 0 : index
    %41 = vector.load %arg2[%c0_16, %c0_17, %c0_18] : memref<1x8x32xf32, #tpu.memory_space<vmem>>, vector<1x8x32xf32>
    %42 = vector.shape_cast %41 : vector<1x8x32xf32> to vector<8x32xf32>
    %43 = arith.addf %40, %42 : vector<8x32xf32>
    %cst_19 = arith.constant dense<0.000000e+00> : vector<8xf32>
    %44 = vector.multi_reduction <add>, %43, %cst_19 [1] : vector<8x32xf32> to vector<8xf32>
    %45 = vector.shape_cast %44 : vector<8xf32> to vector<8x1xf32>
    %cst_20 = arith.constant 3.200000e+01 : f32
    %46 = vector.broadcast %cst_20 : f32 to vector<8x1xf32>
    %47 = arith.divf %45, %46 : vector<8x1xf32>
    %48 = vector.broadcast %47 : vector<8x1xf32> to vector<8x32xf32>
    %49 = arith.subf %43, %48 : vector<8x32xf32>
    %50 = arith.mulf %49, %49 : vector<8x32xf32>
    %cst_21 = arith.constant dense<0.000000e+00> : vector<8xf32>
    %51 = vector.multi_reduction <add>, %50, %cst_21 [1] : vector<8x32xf32> to vector<8xf32>
    %52 = vector.shape_cast %51 : vector<8xf32> to vector<8x1xf32>
    %cst_22 = arith.constant 3.200000e+01 : f32
    %53 = vector.broadcast %cst_22 : f32 to vector<8x1xf32>
    %54 = arith.divf %52, %53 : vector<8x1xf32>
    %cst_23 = arith.constant 9.99999997E-7 : f32
    %55 = vector.broadcast %cst_23 : f32 to vector<8x1xf32>
    %56 = arith.addf %54, %55 : vector<8x1xf32>
    %57 = math.rsqrt %56 : vector<8x1xf32>
    %58 = vector.broadcast %57 : vector<8x1xf32> to vector<8x32xf32>
    %59 = arith.mulf %49, %58 : vector<8x32xf32>
    %c0_24 = arith.constant 0 : index
    %c0_25 = arith.constant 0 : index
    %60 = vector.load %arg7[%c0_24, %c0_25] : memref<1x32xf32, #tpu.memory_space<vmem>>, vector<1x32xf32>
    %61 = vector.broadcast %60 : vector<1x32xf32> to vector<8x32xf32>
    %62 = arith.mulf %59, %61 : vector<8x32xf32>
    %c0_26 = arith.constant 0 : index
    %c0_27 = arith.constant 0 : index
    %63 = vector.load %arg8[%c0_26, %c0_27] : memref<1x32xf32, #tpu.memory_space<vmem>>, vector<1x32xf32>
    %64 = vector.broadcast %63 : vector<1x32xf32> to vector<8x32xf32>
    %65 = arith.addf %62, %64 : vector<8x32xf32>
    %66 = vector.shape_cast %65 : vector<8x32xf32> to vector<1x8x32xf32>
    %c0_28 = arith.constant 0 : index
    %c0_29 = arith.constant 0 : index
    %c0_30 = arith.constant 0 : index
    %67 = vector.load %arg9[%c0_28, %c0_29, %c0_30] : memref<1x8x32xf32, #tpu.memory_space<vmem>>, vector<1x8x32xf32>
    tpu.vector_store %arg9[%c0_28, %c0_29, %c0_30], %66 {strides = array<i32>} : memref<1x8x32xf32, #tpu.memory_space<vmem>>, vector<1x8x32xf32>,
    return
  }
  func.func @transform_0(%arg0: i32) -> (i32, i32, i32) {
    %c0_i32 = arith.constant 0 : i32
    %c0_i32_0 = arith.constant 0 : i32
    %c0_i32_1 = arith.constant 0 : i32
    return %arg0, %c0_i32, %c0_i32_0 : i32, i32, i32
  }
  func.func @transform_1(%arg0: i32) -> (i32, i32, i32) {
    %c0_i32 = arith.constant 0 : i32
    %c0_i32_0 = arith.constant 0 : i32
    %c0_i32_1 = arith.constant 0 : i32
    return %arg0, %c0_i32, %c0_i32_0 : i32, i32, i32
  }
  func.func @transform_2(%arg0: i32) -> (i32, i32) {
    %c0_i32 = arith.constant 0 : i32
    %c0_i32_0 = arith.constant 0 : i32
    %c0_i32_1 = arith.constant 0 : i32
    return %c0_i32, %c0_i32_0 : i32, i32
  }
  func.func @transform_3(%arg0: i32) -> (i32, i32) {
    %c0_i32 = arith.constant 0 : i32
    %c0_i32_0 = arith.constant 0 : i32
    %c0_i32_1 = arith.constant 0 : i32
    return %c0_i32, %c0_i32_0 : i32, i32
  }
  func.func @transform_4(%arg0: i32) -> (i32, i32) {
    %c0_i32 = arith.constant 0 : i32
    %c0_i32_0 = arith.constant 0 : i32
    %c0_i32_1 = arith.constant 0 : i32
    return %c0_i32, %c0_i32_0 : i32, i32
  }
  func.func @transform_5(%arg0: i32) -> (i32, i32) {
    %c0_i32 = arith.constant 0 : i32
    %c0_i32_0 = arith.constant 0 : i32
    %c0_i32_1 = arith.constant 0 : i32
    return %c0_i32, %c0_i32_0 : i32, i32
  }
  func.func @transform_6(%arg0: i32) -> (i32, i32) {
    %c0_i32 = arith.constant 0 : i32
    %c0_i32_0 = arith.constant 0 : i32
    %c0_i32_1 = arith.constant 0 : i32
    return %c0_i32, %c0_i32_0 : i32, i32
  }
  func.func @transform_7(%arg0: i32) -> (i32, i32) {
    %c0_i32 = arith.constant 0 : i32
    %c0_i32_0 = arith.constant 0 : i32
    %c0_i32_1 = arith.constant 0 : i32
    return %c0_i32, %c0_i32_0 : i32, i32
  }
  func.func @transform_8(%arg0: i32) -> (i32, i32, i32) {
    %c0_i32 = arith.constant 0 : i32
    %c0_i32_0 = arith.constant 0 : i32
    %c0_i32_1 = arith.constant 0 : i32
    return %arg0, %c0_i32, %c0_i32_0 : i32, i32, i32
  }
}

</mosaic_0001>

<bundles_post_ra>
// kernel: tpu_custom_call.1
= control target key start
LH: loop header
LB: loop body
LE: loop exit
PB: predicated region body
PF: predicated region fallthrough
CT: control target
= control target key end

     0   :  { %s3613_s0 = inlined_call_operand.hbm [shape: f32[2,8,32], index: 0, kind: input, shape index: {}]   ;;  %s3614_s1 = inlined_call_operand.hbm [shape: f32[2,8,32], index: 1, kind: input, shape index: {}]   ;;  %s3615_s2 = inlined_call_operand.hbm [shape: f32[32,96], index: 2, kind: input, shape index: {}]   ;;  %s3616_s3 = inlined_call_operand.vmem [shape: f32[1,96], index: 3, kind: input, shape index: {}]   ;;  %s3617_s4 = inlined_call_operand.hbm [shape: f32[32,32], index: 4, kind: input, shape index: {}]   ;;  %s3618_s5 = inlined_call_operand.vmem [shape: f32[1,32], index: 5, kind: input, shape index: {}]   ;;  %s3619_s6 = inlined_call_operand.vmem [shape: f32[1,32], index: 6, kind: input, shape index: {}]   ;;  %s3620_s7 = inlined_call_operand.vmem [shape: f32[1,32], index: 7, kind: input, shape index: {}]   ;;  %s3621_s8 = inlined_call_operand.hbm [shape: f32[2,8,32], index: 8, kind: output, shape index: {}]  }
   0x1   :  { %3627 = sst [smem:[#allocation21_spill]] %s3615_s2 }
   0x2   :  { %3628 = sst [smem:[#allocation22_spill]] %s3617_s4 }
   0x3   :  { %13 = vsyncpa [#allocation3], 0 }
   0x4   :  { %15 = vsyncpa [#allocation3 + $0x1], 0 }
   0x5   :  { %16 = vsyncpa [#allocation6], 0 }
   0x6   :  { %18 = vsyncpa [#allocation6 + $0x1], 0 }
   0x7   :  { %19 = vsyncpa [#allocation9], 0 }
   0x8   :  { %20 = vsyncpa [#allocation4], 0 }
   0x9   :  { %22 = vsyncpa [#allocation4 + $0x1], 0  ;;  %s2704_s27 = smov 0   ;;  %s2706_s28 = smov 0  }
   0xa   :  { %s2708_s29 = smov 0   ;;  %s2710_s30 = smov 0  }
   0xb LB: > { %3629 = sst [smem:[#allocation16_spill]] %s2630_s29  ;;  %s2728_s12 = sadd.s32 4294967295, %s2634_s30   ;;  %s2634_s30 = sphi %s2710_s30, %s3653_s30   ;;  %s2630_s29 = sphi %s2708_s29, %s3655_s29   ;;  %s2626_s28 = sphi %s2706_s28, %s3657_s28   ;;  %s2622_s27 = sphi %s2704_s27, %s3656_s27  }
   0xc   : > { %3630 = sst [smem:[#allocation17_spill]] %s2634_s30  ;;  %p2239_p0 = scmp.ge.s32.totalorder %s2634_s30, 1 }
   0xd   : > { %s3631_s2 = sld [smem:[#allocation21_spill]]  ;;  %p49_p1 = scmp.eq.s32.totalorder %s2728_s12, 0 }
   0xe   : > { %p237_p2 = scmp.lt.s32.totalorder %s2634_s30, 3  ;;  %s2636_s14 = smov [#allocation7]  }
   0xf   : > { %s250_s15 = sshll.u32 %s2636_s14, 4  ;;  %s3633_s4 = sld [smem:[#allocation22_spill]]  ;;  %s251_s15 = int_to_ptr.vmem [resolvable:$true] %s250_s15 }
  0x10   : > { %p2733_p3 = pnand %p2239_p0, %p237_p2  ;;  %s2637_s19 = smov [#allocation8]  }
  0x11   : > { %s267_s20 = sshll.u32 %s2637_s19, 4  ;;  %s2638_s21 = smov 128   ;;  %s268_s20 = int_to_ptr.vmem [resolvable:$true] %s267_s20 }
  0x12   : > { %p2297_p4 = pneg %p2733_p3  ;;  %s2639_s22 = smov 8  }
  0x13   : > { %s248_s11 = sshll.u32 %s3631_s2, 4  ;;  %s2238_s23 = sadd.s32 4294967294, %s2634_s30   ;;  %s249_s11 = int_to_ptr.hbm [resolvable:$true] %s248_s11 }
  0x14   : > { %p2298_p6 = pnand %p2297_p4, %p49_p1  ;;  %s2747_s24 = sadd.s32 1, %s2634_s30  }
  0x15   : > { %s265_s18 = sshll.u32 %s3633_s4, 4  ;;  %3634 = sst [smem:[#allocation18_spill]] %s2747_s24  ;;  %s266_s18 = int_to_ptr.hbm [resolvable:$true] %s265_s18 }
  0x16   : > { %2300 = dma.hbm_to_vmem [thread:$0]  (!%p2298_p6), %s249_s11, 512, %s251_s15, [#allocation6], %s2638_s21, %s2638_s21, %s2639_s22  }
  0x17   : > { %2303 = dma.hbm_to_vmem [thread:$0]  (!%p2298_p6), %s266_s18, 512, %s268_s20, [#allocation9], %s2638_s21, %s2638_s21, %s2639_s22  }
  0x18   : > { %s32_s25 = ssub.s32 %s2634_s30, %s2747_s24  ;;  %s35_s26 = sadd.s32 1, %s2630_s29 }
  0x19   : > { %p33_p7 = scmp.eq.s32.totalorder %s32_s25, 0  ;;  %p42_p8 = scmp.ne.s32.totalorder %s2630_s29, %s2626_s28 }
  0x1a   : > { %p43_p9 = scmp.eq.s32.totalorder %s2634_s30, 0  ;;  %p48_p10 = scmp.ne.s32.totalorder %s2626_s28, %s2622_s27 }
  0x1b   : > { %s2758_s9 = scalar_select %p33_p7, %s2630_s29, %s35_s26  }
  0x1c   : > { %p2760_p11 = por %p43_p9, %p42_p8  ;;  %p2766_p12 = por %p49_p1, %p48_p10 }
  0x1d   : > { %3635 = sst [smem:[#allocation19_spill]] %s2758_s9  ;;  %p224_p13 = scmp.eq.s32.totalorder %s2728_s12, 1 }
  0x1e   : > { %p230_p0 = scmp.eq.s32.totalorder %s2238_s23, 1  ;;  %p2317_p2 = scmp.lt.s32.totalorder %s2634_s30, 2 }
  0x1f   : > { %s290_s14 = sand.u32 1, %s2630_s29   ;;  %p2773_p4 = por %p224_p13, %p42_p8 }
  0x20   : > { %p2777_p6 = por %p230_p0, %p48_p10  ;;  %s2781_s17 = sshll.u32 %s290_s14, 3 }
  0x21   : > { %s2244_s18 = sshll.u32 %s2634_s30, 3  ;;  %s294_s22 = scalar_lea.vmem [#allocation2], %s2781_s17 }
  0x22   : > { %s3639_s16 = scalar_select %p2777_p6, 1, 0 }
  0x23   : > { %s298_s21 = scalar_lea.hbm %s3613_s0, %s2244_s18  ;;  %s302_s23 = sshll.u32 %s294_s22, 4  ;;  %s303_s23 = int_to_ptr.vmem [resolvable:$true] %s302_s23 }
  0x24   : > { %3640 = sst [smem:[#allocation20_spill]] %s3639_s16  ;;  %s300_s25 = sshll.u32 %s298_s21, 4  ;;  %s301_s25 = int_to_ptr.hbm [resolvable:$true] %s300_s25 }
  0x25   : > { %p2790_p7 = pnand %p2317_p2, %p2760_p11  ;;  %s317_s9 = scalar_lea.hbm %s3614_s1, %s2244_s18 }
  0x26   : > { %s309_s29 = sand.u32 1, %s2634_s30   ;;  %s291_s24 = scalar_lea.sflag [#allocation3], %s290_s14 }
  0x27   : > { %s2496_s19 = sshra.s32 %s301_s25, 4  ;;  %p2500_p9 = pneg %p2790_p7  ;;  %s2497_s19 = int_to_ptr.hbm [resolvable:$true] %s2496_s19 }
  0x28   : > { %s2498_s20 = scalar_lea.hbm %s2497_s19, 8  ;;  %s2503_s22 = scalar_lea.hbm %s3613_s0, 16 }
  0x29   : > { %p2499_p8 = scmp.ne.s32.totalorder %s2497_s19, %s2498_s20  ;;  %p2504_p13 = scmp.lt.s32.totalorder %s2497_s19, %s3613_s0 }
  0x2a   : > { %p2505_p0 = scmp.lt.s32.totalorder %s2503_s22, %s2498_s20 }
  0x2b   : > { %p2501_p10 = pnand %p2500_p9, %p2499_p8 }
  0x2c   : > { %p2506_p2 = por %p2505_p0, %p2504_p13 }
  0x2d   : > { %p2502_p11 = pneg %p2501_p10 }
  0x2f   : > { %p2507_p5 = pnand %p2506_p2, %p2502_p11 }
  0x31   : > { %2510 = shalt.err (!%p2507_p5)
}
  0x32   : > { %2307 = dma.hbm_to_vmem [thread:$0]  (!%p2790_p7), %s301_s25, 128, %s303_s23, %s291_s24  }
  0x33   : > { %s319_s14 = sshll.u32 %s317_s9, 4  ;;  %s313_s18 = scalar_lea.vmem [#allocation5], %s2781_s17  ;;  %s320_s14 = int_to_ptr.hbm [resolvable:$true] %s319_s14 }
  0x34   : > { %s321_s30 = sshll.u32 %s313_s18, 4  ;;  %s310_s10 = scalar_lea.sflag [#allocation6], %s309_s29  ;;  %s322_s30 = int_to_ptr.vmem [resolvable:$true] %s321_s30 }
  0x35   : > { %s2526_s21 = sshra.s32 %s320_s14, 4  ;;  %s2533_s22 = scalar_lea.hbm %s3614_s1, 16  ;;  %s2527_s21 = int_to_ptr.hbm [resolvable:$true] %s2526_s21 }
  0x36   : > { %s2528_s16 = scalar_lea.hbm %s2527_s21, 8  ;;  %p2534_p5 = scmp.lt.s32.totalorder %s2527_s21, %s3614_s1 }
  0x37   : > { %p2529_p8 = scmp.ne.s32.totalorder %s2527_s21, %s2528_s16  ;;  %p2535_p13 = scmp.lt.s32.totalorder %s2533_s22, %s2528_s16 }
  0x39   : > { %p2531_p10 = pnand %p2529_p8, %p2500_p9  ;;  %p2536_p0 = por %p2535_p13, %p2534_p5 }
  0x3b   : > { %p2532_p11 = pneg %p2531_p10 }
  0x3d   : > { %p2537_p2 = pnand %p2536_p0, %p2532_p11 }
  0x3f   : > { %2540 = shalt.err (!%p2537_p2)
}
  0x40   : > { %2310 = dma.hbm_to_vmem [thread:$0]  (!%p2790_p7), %s320_s14, 128, %s322_s30, %s310_s10  }
  0x41   : > { %330 = sbr.rel (%p2733_p3) target bundleno = 1518 (0x5ee), region = 52  ;;  %s2826_s29 = sand.u32 (!%p2733_p3), 1, %s2626_s28  }
  0x42   : > { %s2829_s9 = sshll.u32 (!%p2733_p3), %s2826_s29, 3  ;;  %s333_s17 = scalar_lea.sflag (!%p2733_p3), [#allocation3], %s2826_s29 }
  0x43   : > { %s336_s16 = scalar_lea.vmem (!%p2733_p3), [#allocation2], %s2829_s9 }
  0x46   : > { %2601 = dma.done.wait (%p2766_p12), %s333_s17, 128  }
  0x47   : > { %2603 = vsyncadd (%p2766_p12), %s333_s17, 4294967168  ;;  %s342_s30 = sand.u32 1, %s2728_s12   ;;  %s346_s23 = scalar_lea.vmem [#allocation5], %s2829_s9 }
  0x48   : > { %s343_s13 = scalar_lea.sflag [#allocation6], %s342_s30 }
  0x49   : > { %2605 = dma.done.wait (%p2766_p12), %s343_s13, 128  }
  0x4a   : > { %2607 = vsyncadd (%p2766_p12), %s343_s13, 4294967168 }
  0x4b   : > { %2609 = dma.done.wait (%p49_p1), [#allocation6], 512  }
  0x4c   : > { %2611 = vsyncadd (%p49_p1), [#allocation6], 4294966784 }
  0x4d   : > { %2613 = dma.done.wait (%p49_p1), [#allocation9], 512  }
  0x4e   : > { %2615 = vsyncadd (%p49_p1), [#allocation9], 4294966784  ;;  %v399_v0 = vld [vmem:[#allocation7 + $0x18] sm:$0xff]  ;;  %v398_v1 = vld [vmem:[#allocation7 + $0x10] sm:$0xff]  ;;  %vm404_vm0 = vcmask 261120   ;;  %s2640_s26 = smov 124  }
  0x4f   : > { %420 = vmatpush.msra.mxu0 %v399_v0  ;;  %v397_v2 = vld [vmem:[#allocation7 + $0x8] sm:$0xff]  ;;  %v396_v3 = vld [vmem:[#allocation7] sm:$0xff]  ;;  %s2641_s4 = smov 112   ;;  %s2642_s14 = smov 120   ;;  %v2649_v26 = vmov 1983009808  }
  0x50   : > { %v395_v4 = vld [vmem:[%s336_s16] sm:$0xff]  ;;  %s2643_s18 = smov 108   ;;  %s2644_s10 = smov 104   ;;  %v457_v27 = vunpack.c.l.s4 %v2649_v26  ;;  %vm452_vm1 = vcmask 1047556   ;;  %v2650_v55 = vmov 1934713408  }
  0x51   : > { %421 = vmatpush.msra.mxu0 %v398_v1  ;;  %v2396_v5 = vld [vmem:[%s3616_s3] ss:$0 sm:$0xff]  ;;  %s2645_s21 = smov 116   ;;  %s2646_s19 = smov 96   ;;  %v505_v56 = vunpack.c.l.s4 %v2650_v55  ;;  %vm1187_vm2 = vcmask 31744   ;;  %vm1396_vm3 = vcmask 64512  }
  0x52   : > { %s2647_s20 = smov 100   ;;  %s2648_s22 = smov 64   ;;  %v2863_v34 = vunpack.c.0.s8 %v457_v27 }
  0x53   : > { %422 = vmatpush.msra.mxu0 %v397_v2  ;;  %s2651_s2 = smov 4   ;;  %s2652_s24 = smov 12  }
  0x54   : > { %s2653_s17 = smov 16   ;;  %s2654_s16 = smov 20  }
  0x55   : > { %423 = vmatpush.msra.mxu0 %v396_v3  ;;  %s2655_s30 = smov 24   ;;  %s2656_s13 = smov 8  }
  0x56   : > { %2253 = vmatmul.msk.f32.vlgmr.msra.gmra.mxu0 %vm404_vm0, %v395_v4  ;;  %s2657_s11 = smov 28  }
  0xd3   : > { %v425_v6 = vpop.f32.mrf.mxu0 }
  0xd4   : > { %v426_v7 = vadd.f32 %v2396_v5, %v425_v6 }
  0xd6   : > { %677 = vrot.lane.b32.xlu2 %v426_v7, %s2640_s26  ;;  %683 = vrot.lane.b32.xlu1 %v426_v7, %s2641_s4  ;;  %v428_v8 = vmul.f32 0.5, %v426_v7 }
  0xd7   : > { %679 = vrot.lane.b32.xlu0 %v426_v7, %s2642_s14 }
  0xd8   : > { %v454_v32 = vrot.slane %v428_v8, 4 }
  0xde   : > { %685 = vrot.lane.b32.xlu2 %v426_v7, %s2643_s18  ;;  %687 = vrot.lane.b32.xlu1 %v426_v7, %s2644_s10 }
  0xdf   : > { %681 = vrot.lane.b32.xlu0 %v426_v7, %s2645_s21 }
  0xe6   : > { %691 = vrot.lane.b32.xlu2 %v426_v7, %s2646_s19  ;;  %436 = vrot.lane.b32.xlu1 %v428_v8, %s2645_s21 }
  0xe7   : > { %689 = vrot.lane.b32.xlu0 %v426_v7, %s2647_s20 }
  0xee   : > { %439 = vrot.lane.b32.xlu2 %v428_v8, %s2641_s4 }
  0xef   : > { %433 = vrot.lane.b32.xlu0 %v428_v8, %s2642_s14 }
  0xf7   : > { %445 = vrot.lane.b32.xlu0 %v428_v8, %s2644_s10 }
 0x130   : > { %v678_v11 = vpop.permute.xlu2 %677 }
 0x131   : > { %v2376_v17 = vpack.i.bf16 %v678_v11, %v426_v7 }
 0x138   : > { %v686_v14 = vpop.permute.xlu2 %685 }
 0x140   : > { %v692_v20 = vpop.permute.xlu2 %691 }
 0x141   : > { %v717_v38 = vrot.slane %v692_v20, 4 }
 0x148   : > { %v684_v9 = vpop.permute.xlu1 %683  ;;  %v440_v21 = vpop.permute.xlu2 %439 }
 0x149   : > { %v680_v10 = vpop.permute.xlu0 %679  ;;  %v478_v35 = vrot.slane %v440_v21, 4 }
 0x14a   : > { %695 = vrot.lane.b32.xlu1 %v680_v10, %s2646_s19  ;;  %v2381_v16 = vpack.i.bf16 %v684_v9, %v680_v10 }
 0x150   : > { %v688_v12 = vpop.permute.xlu1 %687 }
 0x151   : > { %v682_v13 = vpop.permute.xlu0 %681  ;;  %703 = vrot.lane.b32.xlu2 %v688_v12, %s2646_s19 }
 0x152   : > { %699 = vrot.lane.b32.xlu1 %v684_v9, %s2646_s19  ;;  %697 = vrot.lane.b32.xlu0 %v682_v13, %s2646_s19  ;;  %v2386_v18 = vpack.i.bf16 %v686_v14, %v682_v13 }
 0x158   : > { %v2859_v25 = vpop.permute.xlu1 %436 }
 0x159   : > { %v690_v15 = vpop.permute.xlu0 %689  ;;  %701 = vrot.lane.b32.xlu2 %v686_v14, %s2646_s19  ;;  %v464_v57 = vrot.slane %v2859_v25, 4 }
 0x15a   : > { %693 = vrot.lane.b32.xlu1 %v678_v11, %s2646_s19  ;;  %705 = vrot.lane.b32.xlu0 %v690_v15, %s2646_s19  ;;  %v2391_v19 = vpack.i.bf16 %v690_v15, %v688_v12 }
 0x161   : > { %442 = vrot.lane.b32.xlu2 %v428_v8, %s2643_s18  ;;  %v434_v23 = vpop.permute.xlu0 %433 }
 0x162   : > { %430 = vrot.lane.b32.xlu1 %v428_v8, %s2640_s26  ;;  %448 = vrot.lane.b32.xlu0 %v428_v8, %s2647_s20  ;;  %v451_v31 = vrot.slane %v434_v23, 4  ;;  %v455_v36 = vsel %vm452_vm1, %v434_v23, %v454_v32 }
 0x163   : > { %v2870_v42 = vperm.slane %v455_v36, %v2863_v34 }
 0x164   : > { %v453_v37 = vsel %vm452_vm1, %v451_v31, %v428_v8  ;;  %v2900_v8 = vunpack.c.0.s8 %v505_v56 }
 0x165   : > { %v2873_v45 = vperm.slane %v453_v37, %v2863_v34  ;;  %v514_v59 = vrot.slane %v2870_v42, 4 }
 0x167   : > { %v502_v58 = vrot.slane %v2873_v45, 4 }
 0x169   : > { %2382 = vrot.lane.b32.xlu2 %v2381_v16, %s2648_s22  ;;  %v446_v28 = vpop.permute.xlu0 %445 }
 0x16a   : > { %2377 = vrot.lane.b32.xlu1 %v2376_v17, %s2648_s22  ;;  %2387 = vrot.lane.b32.xlu0 %v2386_v18, %s2648_s22  ;;  %v476_v33 = vrot.slane %v446_v28, 4  ;;  %v479_v40 = vsel %vm452_vm1, %v446_v28, %v478_v35 }
 0x16b   : > { %v2880_v49 = vperm.slane %v479_v40, %v2863_v34 }
 0x16c   : > { %v477_v39 = vsel %vm452_vm1, %v476_v33, %v440_v21 }
 0x16d   : > { %v2877_v48 = vperm.slane %v477_v39, %v2863_v34  ;;  %v538_v62 = vrot.slane %v2880_v49, 4 }
 0x16f   : > { %v526_v61 = vrot.slane %v2877_v48, 4 }
 0x172   : > { %2392 = vrot.lane.b32.xlu1 %v2391_v19, %s2648_s22 }
 0x1ab   : > { %v704_v22 = vpop.permute.xlu2 %703 }
 0x1ac   : > { %v739_v50 = vrot.slane %v704_v22, 4 }
 0x1b3   : > { %v2857_v24 = vpop.permute.xlu2 %701 }
 0x1b4   : > { %v753_v1 = vrot.slane %v2857_v24, 4 }
 0x1bb   : > { %v2861_v30 = vpop.permute.xlu2 %442 }
 0x1bc   : > { %v696_v29 = vpop.permute.xlu1 %695  ;;  %v490_v5 = vrot.slane %v2861_v30, 4 }
 0x1bd   : > { %v715_v41 = vrot.slane %v696_v29, 4  ;;  %v718_v46 = vsel %vm452_vm1, %v696_v29, %v717_v38 }
 0x1be   : > { %v726_v53 = vperm.slane %v718_v46, %v2863_v34 }
 0x1bf   : > { %v716_v51 = vsel %vm452_vm1, %v715_v41, %v692_v20 }
 0x1c0   : > { %v722_v63 = vperm.slane %v716_v51, %v2863_v34  ;;  %v777_v6 = vrot.slane %v726_v53, 4 }
 0x1c2   : > { %v765_v15 = vrot.slane %v722_v63, 4 }
 0x1c3   : > { %v2883_v52 = vpop.permute.xlu2 %2382 }
 0x1c4   : > { %v700_v43 = vpop.permute.xlu1 %699  ;;  %v698_v44 = vpop.permute.xlu0 %697  ;;  %v2385_v0 = vunpack.i.h.bf16 %v2883_v52  ;;  %v2384_v2 = vunpack.i.l.bf16 %v2883_v52 }
 0x1c5   : > { %v741_v47 = vrot.slane %v700_v43, 4  ;;  %v740_v60 = vsel %vm452_vm1, %v739_v50, %v700_v43  ;;  %v727_v4 = vrot.slane %v698_v44, 4 }
 0x1c6   : > { %v746_v7 = vperm.slane %v740_v60, %v2863_v34  ;;  %v2906_v16 = vrot.slane %v2385_v0, 4  ;;  %v2912_v19 = vrot.slane %v2384_v2, 4 }
 0x1c7   : > { %v742_v54 = vsel %vm452_vm1, %v704_v22, %v741_v47 }
 0x1c8   : > { %v750_v3 = vperm.slane %v742_v54, %v2863_v34  ;;  %v789_v29 = vrot.slane %v746_v7, 4 }
 0x1ca   : > { %v801_v20 = vrot.slane %v750_v3, 4 }
 0x1cc   : > { %v694_v9 = vpop.permute.xlu1 %693  ;;  %v706_v10 = vpop.permute.xlu0 %705 }
 0x1cd   : > { %v728_v11 = vsel %vm452_vm1, %v727_v4, %v694_v9  ;;  %v729_v12 = vrot.slane %v694_v9, 4  ;;  %v751_v13 = vrot.slane %v706_v10, 4  ;;  %v754_v14 = vsel %vm452_vm1, %v706_v10, %v753_v1 }
 0x1ce   : > { %v734_v17 = vperm.slane %v728_v11, %v2863_v34  ;;  %v762_v18 = vperm.slane %v754_v14, %v2863_v34 }
 0x1cf   : > { %v730_v21 = vsel %vm452_vm1, %v698_v44, %v729_v12  ;;  %v752_v22 = vsel %vm452_vm1, %v751_v13, %v2857_v24 }
 0x1d0   : > { %v738_v23 = vperm.slane %v730_v21, %v2863_v34  ;;  %v763_v26 = vrot.slane %v734_v17, 4  ;;  %v766_v27 = vsel %vm452_vm1, %v734_v17, %v765_v15  ;;  %v758_v28 = vperm.slane %v752_v22, %v2863_v34 }
 0x1d1   : > { %v2921_v31 = vperm.slane %v766_v27, %v2900_v8  ;;  %v799_v32 = vrot.slane %v762_v18, 4  ;;  %v802_v33 = vsel %vm452_vm1, %v762_v18, %v801_v20 }
 0x1d2   : > { %v764_v35 = vsel %vm452_vm1, %v763_v26, %v722_v63  ;;  %v775_v36 = vrot.slane %v738_v23, 4  ;;  %v778_v37 = vsel %vm452_vm1, %v738_v23, %v777_v6  ;;  %v787_v24 = vrot.slane %v758_v28, 4 }
 0x1d3   : > { %v2927_v38 = vperm.slane %v764_v35, %v2900_v8  ;;  %v786_v39 = vperm.slane %v778_v37, %v2900_v8  ;;  %v817_v40 = vrot.slane %v2921_v31, 4  ;;  %v790_v41 = vsel %vm452_vm1, %v758_v28, %v789_v29 }
 0x1d4   : > { %v776_v43 = vsel %vm452_vm1, %v775_v36, %v726_v53  ;;  %v788_v44 = vsel %vm452_vm1, %v787_v24, %v746_v7  ;;  %v2935_v46 = vperm.slane %v790_v41, %v2900_v8  ;;  %v800_v47 = vsel %vm452_vm1, %v799_v32, %v750_v3  ;;  %v431_v50 = vpop.permute.xlu1 %430  ;;  %v449_v3 = vpop.permute.xlu0 %448 }
 0x1d5   : > { %v2939_v51 = vperm.slane %v776_v43, %v2900_v8  ;;  %v813_v54 = vrot.slane %v2927_v38, 4  ;;  %v825_v55 = vrot.slane %v786_v39, 4  ;;  %v2943_v56 = vperm.slane %v788_v44, %v2900_v8 }
 0x1d6   : > { %v2946_v60 = vperm.slane %v800_v47, %v2900_v8  ;;  %v810_v53 = vperm.slane %v802_v33, %v2900_v8  ;;  %v815_v63 = vrot.slane %v2935_v46, 4  ;;  %v2952_v1 = vsel %vm452_vm1, %v2935_v46, %v817_v40 }
 0x1d7   : > { %v821_v4 = vrot.slane %v2939_v51, 4  ;;  %v811_v6 = vrot.slane %v2943_v56, 4  ;;  %v839_v7 = vrot.slane %v2952_v1, 4  ;;  %v465_v9 = vsel %vm452_vm1, %v464_v57, %v431_v50 }
 0x1d8   : > { %v819_v10 = vrot.slane %v2946_v60, 4  ;;  %v823_v11 = vrot.slane %v810_v53, 4  ;;  %v2962_v12 = vsel %vm452_vm1, %v810_v53, %v825_v55  ;;  %v466_v13 = vrot.slane %v431_v50, 4 }
 0x1d9   : > { %v2966_v14 = vsel %vm452_vm1, %v2946_v60, %v821_v4  ;;  %v863_v15 = vrot.slane %v2962_v12, 4  ;;  %v471_v17 = vperm.slane %v465_v9, %v2863_v34  ;;  %v488_v18 = vrot.slane %v449_v3, 4 }
 0x1da   : > { %v2971_v20 = vsel %vm452_vm1, %v823_v11, %v786_v39  ;;  %v865_v57 = vrot.slane %v2966_v14, 4  ;;  %v467_v21 = vsel %vm452_vm1, %v2859_v25, %v466_v13  ;;  %v491_v22 = vsel %vm452_vm1, %v449_v3, %v490_v5 }
 0x1db   : > { %v851_v23 = vrot.slane %v2971_v20, 4  ;;  %v475_v26 = vperm.slane %v467_v21, %v2863_v34  ;;  %v500_v27 = vrot.slane %v471_v17, 4  ;;  %v503_v28 = vsel %vm452_vm1, %v471_v17, %v502_v58 }
 0x1dc   : > { %v511_v29 = vperm.slane %v503_v28, %v2900_v8  ;;  %v489_v32 = vsel %vm452_vm1, %v488_v18, %v2861_v30  ;;  %v499_v25 = vperm.slane %v491_v22, %v2863_v34  ;;  %v2990_v33 = vsel %vm452_vm1, %v811_v6, %v2927_v38  ;;  %v2378_v40 = vpop.permute.xlu1 %2377  ;;  %v3033_v17 = vpop.permute.xlu0 %2387 }
 0x1dd   : > { %v501_v5 = vsel %vm452_vm1, %v500_v27, %v2873_v45  ;;  %v512_v35 = vrot.slane %v475_v26, 4  ;;  %v515_v36 = vsel %vm452_vm1, %v475_v26, %v514_v59  ;;  %v495_v58 = vperm.slane %v489_v32, %v2863_v34 }
 0x1de   : > { %v2999_v37 = vperm.slane %v501_v5, %v2900_v8  ;;  %v523_v30 = vperm.slane %v515_v36, %v2900_v8  ;;  %v554_v24 = vrot.slane %v511_v29, 4  ;;  %v536_v39 = vrot.slane %v499_v25, 4 }
 0x1df   : > { %v513_v41 = vsel %vm452_vm1, %v512_v35, %v2870_v42  ;;  %v524_v43 = vrot.slane %v495_v58, 4  ;;  %v527_v45 = vsel %vm452_vm1, %v495_v58, %v526_v61  ;;  %v539_v59 = vsel %vm452_vm1, %v499_v25, %v538_v62 }
 0x1e0   : > { %v3011_v44 = vperm.slane %v513_v41, %v2900_v8  ;;  %v550_v47 = vrot.slane %v2999_v37, 4  ;;  %v562_v50 = vrot.slane %v523_v30, 4  ;;  %v535_v55 = vperm.slane %v527_v45, %v2900_v8 }
 0x1e1   : > { %v525_v42 = vsel %vm452_vm1, %v524_v43, %v2877_v48  ;;  %v537_v53 = vsel %vm452_vm1, %v536_v39, %v2880_v49  ;;  %v547_v61 = vperm.slane %v539_v59, %v2900_v8  ;;  %v2380_v3 = vunpack.i.h.bf16 %v2378_v40 }
 0x1e2   : > { %v558_v4 = vrot.slane %v3011_v44, 4  ;;  %v3022_v62 = vperm.slane %v525_v42, %v2900_v8  ;;  %v3025_v6 = vperm.slane %v537_v53, %v2900_v8  ;;  %v552_v9 = vrot.slane %v535_v55, 4 }
 0x1e3   : > { %v3028_v11 = vsel %vm452_vm1, %v535_v55, %v554_v24  ;;  %v560_v13 = vrot.slane %v547_v61, 4  ;;  %v3031_v48 = vsel %vm452_vm1, %v547_v61, %v562_v50  ;;  %v977_v49 = vrot.slane %v2380_v3, 4 }
 0x1e4   : > { %v548_v18 = vrot.slane %v3022_v62, 4  ;;  %v3037_v21 = vsel %vm452_vm1, %v552_v9, %v511_v29  ;;  %v556_v22 = vrot.slane %v3025_v6, 4  ;;  %v3042_v26 = vsel %vm452_vm1, %v3025_v6, %v558_v4 }
 0x1e5   : > { %v3045_v27 = vsel %vm452_vm1, %v560_v13, %v523_v30  ;;  %v576_v28 = vrot.slane %v3028_v11, 4  ;;  %v600_v32 = vrot.slane %v3031_v48, 4  ;;  %v602_v25 = vrot.slane %v3042_v26, 4 }
 0x1e6   : > { %v588_v5 = vrot.slane %v3045_v27, 4  ;;  %v2379_v35 = vunpack.i.l.bf16 %v2378_v40  ;;  %v2390_v29 = vunpack.i.h.bf16 %v3033_v17  ;;  %v2389_v36 = vunpack.i.l.bf16 %v3033_v17 }
 0x1e7   : > { %v3055_v58 = vsel %vm452_vm1, %v3031_v48, %v602_v25  ;;  %v3061_v30 = vsel %vm452_vm1, %v2943_v56, %v813_v54  ;;  %v3067_v24 = vsel %vm452_vm1, %v815_v63, %v2921_v31  ;;  %v3073_v39 = vsel %vm452_vm1, %v819_v10, %v2939_v51 }
 0x1e8   : > { %v964_v40 = vsel %vm452_vm1, %v2912_v19, %v2379_v35  ;;  %v965_v38 = vrot.slane %v2379_v35, 4  ;;  %v1001_v54 = vrot.slane %v2390_v29, 4  ;;  %v975_v56 = vrot.slane %v2389_v36, 4 }
 0x1e9   : > { %v970_v41 = vperm.slane %v964_v40, %v2863_v34  ;;  %v978_v46 = vsel %vm452_vm1, %v2389_v36, %v977_v49  ;;  %v827_v31 = vrot.slane %v3067_v24, 4  ;;  %v829_v63 = vrot.slane %v2990_v33, 4 }
 0x1ea   : > { %v966_v51 = vsel %vm452_vm1, %v2384_v2, %v965_v38  ;;  %v976_v60 = vsel %vm452_vm1, %v975_v56, %v2380_v3  ;;  %v986_v19 = vperm.slane %v978_v46, %v2863_v34  ;;  %v840_v10 = vsel %vm452_vm1, %v839_v7, %v3061_v30  ;;  %v2393_v56 = vpop.permute.xlu1 %2392 }
 0x1eb   : > { %v974_v43 = vperm.slane %v966_v51, %v2863_v34  ;;  %v1013_v45 = vrot.slane %v970_v41, 4  ;;  %v982_v59 = vperm.slane %v976_v60, %v2863_v34  ;;  %v828_v50 = vsel %vm452_vm1, %v827_v31, %v2990_v33 }
 0x1ec   : > { %v1023_v55 = vrot.slane %v986_v19, 4  ;;  %v834_v2 = vperm.slane %v828_v50, %v2863_v34  ;;  %v841_v42 = vrot.slane %v3061_v30, 4  ;;  %v846_v53 = vperm.slane %v840_v10, %v2863_v34 }
 0x1ed   : > { %v1025_v61 = vrot.slane %v974_v43, 4  ;;  %v1011_v3 = vrot.slane %v982_v59, 4  ;;  %v1014_v4 = vsel %vm452_vm1, %v982_v59, %v1013_v45  ;;  %v852_v7 = vsel %vm452_vm1, %v851_v23, %v3073_v39 }
 0x1ee   : > { %v3105_v9 = vperm.slane %v1014_v4, %v2900_v8  ;;  %v1024_v33 = vsel %vm452_vm1, %v1023_v55, %v974_v43  ;;  %v853_v13 = vrot.slane %v3073_v39, 4  ;;  %v858_v49 = vperm.slane %v852_v7, %v2863_v34 }
 0x1ef   : > { %v1012_v25 = vsel %vm452_vm1, %v1011_v3, %v970_v41  ;;  %v1026_v35 = vsel %vm452_vm1, %v986_v19, %v1025_v61  ;;  %v3113_v36 = vperm.slane %v1024_v33, %v2900_v8  ;;  %v864_v23 = vsel %vm452_vm1, %v863_v15, %v2966_v14 }
 0x1f0   : > { %v3120_v30 = vperm.slane %v1012_v25, %v2900_v8  ;;  %v3123_v40 = vperm.slane %v1026_v35, %v2900_v8  ;;  %v1065_v39 = vrot.slane %v3105_v9, 4  ;;  %v870_v38 = vperm.slane %v864_v23, %v2863_v34 }
 0x1f1   : > { %v1069_v41 = vrot.slane %v3113_v36, 4  ;;  %v875_v46 = vrot.slane %v846_v53, 4  ;;  %v877_v31 = vrot.slane %v834_v2, 4  ;;  %v901_v19 = vrot.slane %v858_v49, 4 }
 0x1f2   : > { %v1061_v51 = vrot.slane %v3120_v30, 4  ;;  %v1073_v15 = vrot.slane %v3123_v40, 4  ;;  %v899_v60 = vrot.slane %v870_v38, 4  ;;  %v2395_v45 = vunpack.i.h.bf16 %v2393_v56 }
 0x1f3   : > { %v876_v10 = vsel %vm452_vm1, %v875_v46, %v834_v2  ;;  %v878_v43 = vsel %vm452_vm1, %v846_v53, %v877_v31  ;;  %v2394_v59 = vunpack.i.l.bf16 %v2393_v56  ;;  %v902_v3 = vsel %vm452_vm1, %v870_v38, %v901_v19 }
 0x1f4   : > { %v882_v50 = vperm.slane %v876_v10, %v2900_v8  ;;  %v900_v55 = vsel %vm452_vm1, %v899_v60, %v858_v49  ;;  %v3135_v61 = vperm.slane %v878_v43, %v2900_v8  ;;  %v3140_v7 = vperm.slane %v902_v3, %v2900_v8 }
 0x1f5   : > { %v906_v4 = vperm.slane %v900_v55, %v2900_v8  ;;  %v999_v33 = vrot.slane %v2395_v45, 4  ;;  %v987_v2 = vrot.slane %v2394_v59, 4  ;;  %v990_v53 = vsel %vm452_vm1, %v2394_v59, %v2906_v16 }
 0x1f6   : > { %v925_v25 = vrot.slane %v882_v50, 4  ;;  %v1002_v35 = vsel %vm452_vm1, %v2395_v45, %v1001_v54  ;;  %v830_v49 = vsel %vm452_vm1, %v3067_v24, %v829_v63  ;;  %v927_v23 = vrot.slane %v3140_v7, 4 }
 0x1f7   : > { %v988_v38 = vsel %vm452_vm1, %v987_v2, %v2385_v0  ;;  %v998_v56 = vperm.slane %v990_v53, %v2863_v34  ;;  %v1000_v46 = vsel %vm452_vm1, %v999_v33, %v2390_v29  ;;  %v1010_v24 = vperm.slane %v1002_v35, %v2863_v34 }
 0x1f8   : > { %v926_v31 = vsel %vm452_vm1, %v906_v4, %v925_v25  ;;  %v994_v16 = vperm.slane %v988_v38, %v2863_v34  ;;  %v1006_v54 = vperm.slane %v1000_v46, %v2863_v34  ;;  %v928_v52 = vsel %vm452_vm1, %v927_v23, %v3135_v61 }
 0x1f9   : > { %2256 = vmatpush.xpose.msk.msra.mxu2 %vm1187_vm2, %v926_v31  ;;  %v1049_v0 = vrot.slane %v998_v56, 4  ;;  %v923_v63 = vrot.slane %v906_v4, 4  ;;  %v838_v60 = vperm.slane %v830_v49, %v2863_v34  ;;  %2258 = vmatpush.xpose.msk.msra.mxu3 %vm1187_vm2, %v928_v52  ;;  %v1047_v19 = vrot.slane %v1010_v24, 4 }
 0x1fa   : > { %v1035_v17 = vrot.slane %v1006_v54, 4  ;;  %v1037_v29 = vrot.slane %v994_v16, 4  ;;  %v842_v10 = vsel %vm452_vm1, %v2952_v1, %v841_v42  ;;  %v854_v55 = vsel %vm452_vm1, %v2971_v20, %v853_v13 }
 0x1fb   : > { %v1050_v43 = vsel %vm452_vm1, %v1010_v24, %v1049_v0  ;;  %v924_v45 = vsel %vm452_vm1, %v923_v63, %v882_v50  ;;  %v850_v59 = vperm.slane %v842_v10, %v2863_v34  ;;  %v1048_v33 = vsel %vm452_vm1, %v1047_v19, %v998_v56 }
 0x1fc   : > { %v1036_v3 = vsel %vm452_vm1, %v1035_v17, %v994_v16  ;;  %v1038_v4 = vsel %vm452_vm1, %v1006_v54, %v1037_v29  ;;  %v1058_v2 = vperm.slane %v1050_v43, %v2900_v8  ;;  %2254 = vmatpush.xpose.msk.msra.mxu1 %vm1187_vm2, %v924_v45  ;;  %v3183_v50 = vperm.slane %v1048_v33, %v2900_v8 }
 0x1fd   : > { %v3177_v1 = vperm.slane %v1036_v3, %v2900_v8  ;;  %v3180_v42 = vperm.slane %v1038_v4, %v2900_v8  ;;  %v862_v20 = vperm.slane %v854_v55, %v2863_v34  ;;  %v866_v53 = vsel %vm452_vm1, %v2962_v12, %v865_v57 }
 0x1fe   : > { %v1071_v13 = vrot.slane %v1058_v2, 4  ;;  %v3187_v25 = vsel %vm452_vm1, %v1058_v2, %v1073_v15  ;;  %v887_v35 = vrot.slane %v850_v59, 4  ;;  %v1067_v56 = vrot.slane %v3183_v50, 4 }
 0x1ff   : > { %v1059_v49 = vrot.slane %v3177_v1, 4  ;;  %v1063_v23 = vrot.slane %v3180_v42, 4  ;;  %v3199_v38 = vsel %vm452_vm1, %v3180_v42, %v1065_v39  ;;  %v3206_v14 = vsel %vm452_vm1, %v3183_v50, %v1069_v41 }
 0x200   : > { %v3210_v12 = vsel %vm452_vm1, %v1071_v13, %v3123_v40  ;;  %v1087_v57 = vrot.slane %v3199_v38, 4  ;;  %v1111_v15 = vrot.slane %v3187_v25, 4  ;;  %v1113_v39 = vrot.slane %v3206_v14, 4 }
 0x201   : > { %v1099_v46 = vrot.slane %v3210_v12, 4  ;;  %v874_v31 = vperm.slane %v866_v53, %v2863_v34  ;;  %v888_v16 = vsel %vm452_vm1, %v887_v35, %v838_v60  ;;  %v889_v41 = vrot.slane %v838_v60, 4 }
 0x202   : > { %v894_v54 = vperm.slane %v888_v16, %v2900_v8  ;;  %v913_v24 = vrot.slane %v862_v20, 4  ;;  %v929_v52 = vrot.slane %v3135_v61, 4  ;;  %v549_v0 = vsel %vm452_vm1, %v548_v18, %v2999_v37 }
 0x203   : > { %v911_v40 = vrot.slane %v874_v31, 4  ;;  %v551_v63 = vsel %vm452_vm1, %v3022_v62, %v550_v47  ;;  %v557_v17 = vsel %vm452_vm1, %v556_v22, %v3011_v44  ;;  %v890_v29 = vsel %vm452_vm1, %v850_v59, %v889_v41 }
 0x204   : > { %v933_v60 = vrot.slane %v894_v54, 4  ;;  %v914_v61 = vsel %vm452_vm1, %v874_v31, %v913_v24  ;;  %v930_v19 = vsel %vm452_vm1, %v3140_v7, %v929_v52  ;;  %v898_v37 = vperm.slane %v890_v29, %v2900_v8 }
 0x205   : > { %v912_v18 = vsel %vm452_vm1, %v911_v40, %v862_v20  ;;  %v922_v10 = vperm.slane %v914_v61, %v2900_v8  ;;  %2260 = vmatpush.xpose.msk.msrb.mxu1 %vm1187_vm2, %v930_v19  ;;  %v564_v47 = vrot.slane %v3037_v21, 4  ;;  %v566_v62 = vrot.slane %v549_v0, 4 }
 0x206   : > { %v918_v44 = vperm.slane %v912_v18, %v2900_v8  ;;  %v577_v6 = vsel %vm452_vm1, %v576_v28, %v551_v63  ;;  %v589_v22 = vsel %vm452_vm1, %v588_v5, %v557_v17  ;;  %v937_v43 = vrot.slane %v898_v37, 4 }
 0x207   : > { %v935_v7 = vrot.slane %v922_v10, 4  ;;  %v565_v45 = vsel %vm452_vm1, %v564_v47, %v549_v0  ;;  %v583_v59 = vperm.slane %v577_v6, %v2863_v34  ;;  %v590_v33 = vrot.slane %v557_v17, 4 }
 0x208   : > { %v934_v55 = vsel %vm452_vm1, %v918_v44, %v933_v60  ;;  %v931_v3 = vrot.slane %v918_v44, 4  ;;  %v571_v4 = vperm.slane %v565_v45, %v2863_v34  ;;  %v595_v2 = vperm.slane %v589_v22, %v2863_v34 }
 0x209   : > { %2264 = vmatpush.xpose.msk.msrb.mxu3 %vm1187_vm2, %v934_v55  ;;  %v936_v28 = vsel %vm452_vm1, %v935_v7, %v898_v37  ;;  %v601_v5 = vsel %vm452_vm1, %v600_v32, %v3042_v26  ;;  %v612_v20 = vrot.slane %v583_v59, 4  ;;  %v567_v31 = vsel %vm452_vm1, %v3037_v21, %v566_v62 }
 0x20a   : > { %2266 = vmatpush.xpose.msk.msrb.mxu0 %vm1187_vm2, %v936_v28  ;;  %v932_v13 = vsel %vm452_vm1, %v931_v3, %v894_v54  ;;  %v607_v53 = vperm.slane %v601_v5, %v2863_v34  ;;  %v614_v35 = vrot.slane %v571_v4, 4  ;;  %v638_v41 = vrot.slane %v595_v2, 4 }
 0x20b   : > { %2262 = vmatpush.xpose.msk.msrb.mxu2 %vm1187_vm2, %v932_v13  ;;  %v613_v16 = vsel %vm452_vm1, %v612_v20, %v571_v4  ;;  %v575_v48 = vperm.slane %v567_v31, %v2863_v34  ;;  %v578_v24 = vrot.slane %v551_v63, 4  ;;  %v591_v54 = vsel %vm452_vm1, %v3045_v27, %v590_v33 }
 0x20c   : > { %v619_v26 = vperm.slane %v613_v16, %v2900_v8  ;;  %v636_v32 = vrot.slane %v607_v53, 4  ;;  %v615_v52 = vsel %vm452_vm1, %v583_v59, %v614_v35  ;;  %v639_v21 = vsel %vm452_vm1, %v607_v53, %v638_v41 }
 0x20d   : > { %v623_v40 = vperm.slane %v615_v52, %v2900_v8  ;;  %v579_v0 = vsel %vm452_vm1, %v3028_v11, %v578_v24  ;;  %v599_v17 = vperm.slane %v591_v54, %v2863_v34  ;;  %v647_v29 = vperm.slane %v639_v21, %v2900_v8 }
 0x20e   : > { %v637_v60 = vsel %vm452_vm1, %v636_v32, %v595_v2  ;;  %v662_v63 = vrot.slane %v619_v26, 4  ;;  %v587_v61 = vperm.slane %v579_v0, %v2863_v34  ;;  %v611_v27 = vperm.slane %v3055_v58, %v2863_v34 }
 0x20f   : > { %v643_v19 = vperm.slane %v637_v60, %v2900_v8  ;;  %v626_v18 = vrot.slane %v575_v48, 4  ;;  %v650_v37 = vrot.slane %v599_v17, 4  ;;  %v664_v47 = vrot.slane %v647_v29, 4 }
 0x210   : > { %v938_v44 = vsel %vm452_vm1, %v922_v10, %v937_v43  ;;  %v624_v11 = vrot.slane %v587_v61, 4  ;;  %v666_v62 = vrot.slane %v623_v40, 4  ;;  %v648_v4 = vrot.slane %v611_v27, 4 }
 0x211   : > { %v663_v6 = vsel %vm452_vm1, %v643_v19, %v662_v63  ;;  %v660_v22 = vrot.slane %v643_v19, 4  ;;  %v627_v7 = vsel %vm452_vm1, %v587_v61, %v626_v18  ;;  %v651_v45 = vsel %vm452_vm1, %v611_v27, %v650_v37 }
 0x212   : > { %2257 = vmatmul.msk.f32.vlgmr.msra.gmra.mxu2 %vm1187_vm2, %v663_v6  ;;  %v665_v59 = vsel %vm452_vm1, %v664_v47, %v623_v40  ;;  %v635_v58 = vperm.slane %v627_v7, %v2900_v8  ;;  %v659_v55 = vperm.slane %v651_v45, %v2900_v8  ;;  %v625_v3 = vsel %vm452_vm1, %v624_v11, %v575_v48 }
 0x213   : > { %2259 = vmatmul.msk.f32.vlgmr.msra.gmra.mxu3 %vm1187_vm2, %v665_v59  ;;  %v661_v10 = vsel %vm452_vm1, %v660_v22, %v619_v26  ;;  %v631_v43 = vperm.slane %v625_v3, %v2900_v8  ;;  %v667_v33 = vsel %vm452_vm1, %v647_v29, %v666_v62  ;;  %v1060_v5 = vsel %vm452_vm1, %v1059_v49, %v3120_v30 }
 0x214   : > { %2255 = vmatmul.msk.f32.vlgmr.msra.gmra.mxu1 %vm1187_vm2, %v661_v10  ;;  %v672_v28 = vrot.slane %v659_v55, 4  ;;  %v674_v2 = vrot.slane %v635_v58, 4  ;;  %v1062_v20 = vsel %vm452_vm1, %v3177_v1, %v1061_v51  ;;  %v649_v13 = vsel %vm452_vm1, %v648_v4, %v599_v17 }
 0x215   : > { %2268 = vmatpush.xpose.msk.msra.mxu1 %vm1187_vm2, %v938_v44  ;;  %v670_v53 = vrot.slane %v631_v43, 4  ;;  %v1064_v35 = vsel %vm452_vm1, %v1063_v23, %v3105_v9  ;;  %v1068_v49 = vsel %vm452_vm1, %v1067_v56, %v3113_v36  ;;  %v655_v31 = vperm.slane %v649_v13, %v2900_v8 }
 0x216   : > { %v673_v30 = vsel %vm452_vm1, %v672_v28, %v635_v58  ;;  %v675_v51 = vsel %vm452_vm1, %v659_v55, %v674_v2  ;;  %v1075_v1 = vrot.slane %v1064_v35, 4  ;;  %v1077_v16 = vrot.slane %v1060_v5, 4 }
 0x217   : > { %2267 = vmatmul.msk.f32.vlgmr.msrb.gmra.mxu0 %vm1187_vm2, %v673_v30  ;;  %v1088_v42 = vsel %vm452_vm1, %v1087_v57, %v1062_v20  ;;  %v1089_v9 = vrot.slane %v1062_v20, 4  ;;  %v1100_v50 = vsel %vm452_vm1, %v1099_v46, %v1068_v49  ;;  %v668_v36 = vrot.slane %v655_v31, 4 }
 0x218   : > { %v671_v23 = vsel %vm452_vm1, %v655_v31, %v670_v53  ;;  %v1076_v56 = vsel %vm452_vm1, %v1075_v1, %v1060_v5  ;;  %v1094_v41 = vperm.slane %v1088_v42, %v2863_v34  ;;  %v1101_v24 = vrot.slane %v1068_v49, 4 }
 0x219   : > { %v1082_v48 = vperm.slane %v1076_v56, %v2863_v34  ;;  %v1106_v26 = vperm.slane %v1100_v50, %v2863_v34  ;;  %v1112_v57 = vsel %vm452_vm1, %v1111_v15, %v3206_v14  ;;  %v669_v32 = vsel %vm452_vm1, %v668_v36, %v631_v43 }
 0x21a   : > { %v1118_v46 = vperm.slane %v1112_v57, %v2863_v34  ;;  %v1123_v52 = vrot.slane %v1094_v41, 4  ;;  %v1078_v54 = vsel %vm452_vm1, %v1064_v35, %v1077_v16  ;;  %2263 = vmatmul.msk.f32.vlgmr.msrb.gmra.mxu2 %vm1187_vm2, %v669_v32  ;;  %v1090_v21 = vsel %vm452_vm1, %v3199_v38, %v1089_v9 }
 0x21b   : > { %2265 = vmatmul.msk.f32.vlgmr.msrb.gmra.mxu3 %vm1187_vm2, %v671_v23  ;;  %v1086_v40 = vperm.slane %v1078_v54, %v2863_v34  ;;  %v1102_v0 = vsel %vm452_vm1, %v3210_v12, %v1101_v24  ;;  %v1125_v15 = vrot.slane %v1082_v48, 4  ;;  %v1098_v63 = vperm.slane %v1090_v21, %v2863_v34 }
 0x21c   : > { %2261 = vmatmul.msk.f32.vlgmr.msrb.gmra.mxu1 %vm1187_vm2, %v667_v33  ;;  %v1124_v17 = vsel %vm452_vm1, %v1123_v52, %v1082_v48  ;;  %v1147_v60 = vrot.slane %v1118_v46, 4  ;;  %v1110_v29 = vperm.slane %v1102_v0, %v2863_v34  ;;  %v1114_v38 = vsel %vm452_vm1, %v3187_v25, %v1113_v39 }
 0x21d   : > { %v1130_v61 = vperm.slane %v1124_v17, %v2900_v8  ;;  %v1126_v19 = vsel %vm452_vm1, %v1094_v41, %v1125_v15  ;;  %v1149_v12 = vrot.slane %v1106_v26, 4  ;;  %v1122_v18 = vperm.slane %v1114_v38, %v2863_v34 }
 0x21e   : > { %v1148_v27 = vsel %vm452_vm1, %v1147_v60, %v1106_v26  ;;  %v1135_v37 = vrot.slane %v1098_v63, 4  ;;  %v1134_v47 = vperm.slane %v1126_v19, %v2900_v8  ;;  %v1137_v6 = vrot.slane %v1086_v40, 4 }
 0x21f   : > { %v1154_v44 = vperm.slane %v1148_v27, %v2900_v8  ;;  %v1173_v11 = vrot.slane %v1130_v61, 4  ;;  %v1150_v62 = vsel %vm452_vm1, %v1118_v46, %v1149_v12  ;;  %v1159_v22 = vrot.slane %v1122_v18, 4 }
 0x220   : > { %v1136_v14 = vsel %vm452_vm1, %v1135_v37, %v1086_v40  ;;  %v1158_v25 = vperm.slane %v1150_v62, %v2900_v8  ;;  %v1161_v39 = vrot.slane %v1110_v29, 4  ;;  %v1138_v58 = vsel %vm452_vm1, %v1098_v63, %v1137_v6 }
 0x221   : > { %v1171_v7 = vrot.slane %v1154_v44, 4  ;;  %v1142_v45 = vperm.slane %v1136_v14, %v2900_v8  ;;  %v1174_v59 = vsel %vm452_vm1, %v1154_v44, %v1173_v11  ;;  %v1160_v55 = vsel %vm452_vm1, %v1159_v22, %v1110_v29 }
 0x222   : > { %1510 = vmatpush.msra.mxu3 %v1174_v59  ;;  %v1175_v3 = vrot.slane %v1158_v25, 4  ;;  %v1146_v10 = vperm.slane %v1138_v58, %v2900_v8  ;;  %v1162_v43 = vsel %vm452_vm1, %v1122_v18, %v1161_v39  ;;  %v1166_v33 = vperm.slane %v1160_v55, %v2900_v8 }
 0x223   : > { %v1172_v4 = vsel %vm452_vm1, %v1171_v7, %v1130_v61  ;;  %v1181_v28 = vrot.slane %v1142_v45, 4  ;;  %v1170_v2 = vperm.slane %v1162_v43, %v2900_v8  ;;  %v1177_v20 = vrot.slane %v1134_v47, 4 }
 0x224   : > { %2269 = vmatmul.msk.f32.vlgmr.msra.gmra.mxu1 %vm1187_vm2, %v675_v51  ;;  %1487 = vmatpush.msra.mxu2 %v1172_v4  ;;  %v1176_v5 = vsel %vm452_vm1, %v1175_v3, %v1134_v47  ;;  %v1185_v13 = vrot.slane %v1146_v10, 4  ;;  %v1179_v53 = vrot.slane %v1166_v33, 4 }
 0x225   : > { %1533 = vmatpush.msra.mxu0 %v1176_v5  ;;  %v1182_v35 = vsel %vm452_vm1, %v1166_v33, %v1181_v28  ;;  %v1183_v49 = vrot.slane %v1170_v2, 4  ;;  %v1178_v30 = vsel %vm452_vm1, %v1158_v25, %v1177_v20 }
 0x226   : > { %1602 = vmatpush.msrb.mxu3 %v1182_v35  ;;  %v1186_v31 = vsel %vm452_vm1, %v1170_v2, %v1185_v13  ;;  %v1180_v1 = vsel %vm452_vm1, %v1179_v53, %v1142_v45  ;;  %1556 = vmatpush.msrb.mxu1 %v1178_v30 }
 0x227   : > { %v1184_v16 = vsel %vm452_vm1, %v1183_v49, %v1146_v10  ;;  %1579 = vmatpush.msrb.mxu2 %v1180_v1 }
 0x228   : > { %1625 = vmatpush.msrb.mxu0 %v1184_v16  ;;  %1648 = vmatpush.msra.mxu1 %v1186_v31 }
 0x291   : > { %v1211_v51 = vpop.f32.mrf.mxu1 }
 0x292   : > { %v1397_v42 = vsel %vm1396_vm3, %v1211_v51, -inf }
 0x293   : > { %1398 = vmax.xlane.f32.xlu2 %v1397_v42 }
 0x294   : > { %v1367_v56 = vpop.f32.mrf.mxu0 }
 0x295   : > { %v1237_v9 = vpop.f32.mrf.mxu2  ;;  %v1415_v24 = vsel %vm1396_vm3, %v1367_v56, -inf }
 0x296   : > { %v1263_v50 = vpop.f32.mrf.mxu3  ;;  %v1400_v36 = vsel %vm1396_vm3, %v1237_v9, -inf }
 0x297   : > { %v1403_v23 = vsel %vm1396_vm3, %v1263_v50, -inf  ;;  %1401 = vmax.xlane.f32.xlu0 %v1400_v36 }
 0x298   : > { %1404 = vmax.xlane.f32.xlu1 %v1403_v23 }
 0x299   : > { %v1289_v32 = vpop.f32.mrf.mxu1 }
 0x29a   : > { %v1406_v46 = vsel %vm1396_vm3, %v1289_v32, -inf }
 0x29d   : > { %v1315_v41 = vpop.f32.mrf.mxu2 }
 0x29e   : > { %v1341_v48 = vpop.f32.mrf.mxu3  ;;  %v1409_v57 = vsel %vm1396_vm3, %v1315_v41, -inf }
 0x29f   : > { %v1412_v26 = vsel %vm1396_vm3, %v1341_v48, -inf  ;;  %1410 = vmax.xlane.f32.xlu2 %v1409_v57 }
 0x2a0   : > { %1416 = vmax.xlane.f32.xlu1 %v1415_v24  ;;  %1413 = vmax.xlane.f32.xlu0 %v1412_v26 }
 0x2a1   : > { %v1393_v52 = vpop.f32.mrf.mxu1 }
 0x2a2   : > { %v1418_v54 = vsel %vm1396_vm3, %v1393_v52, -inf }
 0x2a7   : > { %1407 = vmax.xlane.f32.xlu2 %v1406_v46 }
 0x2af   : > { %1419 = vmax.xlane.f32.xlu2 %v1418_v54 }
 0x306   : > { %v1399_v40 = vpop.xlane.xlu2 %1398 }
 0x307   : > { %v1421_v21 = vsub.f32 %v1211_v51, %v1399_v40 }
 0x309   : > { %v1429_v0 = vmul.f32 1.442695, %v1421_v21 }
 0x30a   : > { %v1402_v15 = vpop.xlane.xlu0 %1401 }
 0x30b   : > { %2400 = vpow2.f32 %v1429_v0  ;;  %v1405_v17 = vpop.xlane.xlu1 %1404  ;;  %v1422_v60 = vsub.f32 %v1237_v9, %v1402_v15 }
 0x30c   : > { %v1423_v63 = vsub.f32 %v1263_v50, %v1405_v17 }
 0x30d   : > { %v1431_v29 = vmul.f32 1.442695, %v1422_v60 }
 0x30e   : > { %v1433_v61 = vmul.f32 1.442695, %v1423_v63 }
 0x30f   : > { %2402 = vpow2.f32 %v1431_v29 }
 0x310   : > { %2404 = vpow2.f32 %v1433_v61 }
 0x311   : > { %v2401_v38 = vpop.eup %2400 }
 0x312   : > { %2270 = vmatmul.msk.f32.vlgmr.msra.gmra.mxu2 %vm1396_vm3, %v2401_v38  ;;  %v1445_v19 = vsel %vm1396_vm3, %v2401_v38, 0.0  ;;  %v1411_v47 = vpop.xlane.xlu2 %1410 }
 0x313   : > { %v1417_v12 = vpop.xlane.xlu1 %1416  ;;  %v1414_v27 = vpop.xlane.xlu0 %1413  ;;  %1446 = vadd.xlane.f32.xlu2 %v1445_v19  ;;  %v1425_v11 = vsub.f32 %v1315_v41, %v1411_v47 }
 0x314   : > { %v1427_v18 = vsub.f32 %v1367_v56, %v1417_v12  ;;  %v1426_v37 = vsub.f32 %v1341_v48, %v1414_v27 }
 0x315   : > { %v2403_v44 = vpop.eup %2402  ;;  %v1437_v22 = vmul.f32 1.442695, %v1425_v11 }
 0x316   : > { %v2405_v62 = vpop.eup %2404  ;;  %v1441_v6 = vmul.f32 1.442695, %v1427_v18  ;;  %v1439_v14 = vmul.f32 1.442695, %v1426_v37  ;;  %2271 = vmatmul.msk.f32.vlgmr.msra.gmra.mxu3 %vm1396_vm3, %v2403_v44  ;;  %v1448_v39 = vsel %vm1396_vm3, %v2403_v44, 0.0 }
 0x317   : > { %2272 = vmatmul.msk.f32.vlgmr.msra.gmra.mxu0 %vm1396_vm3, %v2405_v62  ;;  %v1451_v25 = vsel %vm1396_vm3, %v2405_v62, 0.0 }
 0x318   : > { %2406 = vpow2.f32 %v1441_v6  ;;  %1452 = vadd.xlane.f32.xlu0 %v1451_v25 }
 0x319   : > { %2408 = vpow2.f32 %v1439_v14 }
 0x31a   : > { %2410 = vpow2.f32 %v1437_v22  ;;  %v1408_v7 = vpop.xlane.xlu2 %1407 }
 0x31b   : > { %1449 = vadd.xlane.f32.xlu2 %v1448_v39  ;;  %v1424_v45 = vsub.f32 %v1289_v32, %v1408_v7 }
 0x31d   : > { %v1435_v55 = vmul.f32 1.442695, %v1424_v45 }
 0x31e   : > { %v2407_v59 = vpop.eup %2406 }
 0x31f   : > { %v2409_v58 = vpop.eup %2408  ;;  %2276 = vmatmul.msk.f32.vlgmr.msrb.gmra.mxu0 %vm1396_vm3, %v2407_v59  ;;  %v1463_v3 = vsel %vm1396_vm3, %v2407_v59, 0.0  ;;  %2412 = vpow2.f32 %v1435_v55 }
 0x320   : > { %v2411_v10 = vpop.eup %2410  ;;  %2275 = vmatmul.msk.f32.vlgmr.msrb.gmra.mxu3 %vm1396_vm3, %v2409_v58  ;;  %1464 = vadd.xlane.f32.xlu1 %v1463_v3  ;;  %v1460_v13 = vsel %vm1396_vm3, %v2409_v58, 0.0 }
 0x321   : > { %2274 = vmatmul.msk.f32.vlgmr.msrb.gmra.mxu2 %vm1396_vm3, %v2411_v10  ;;  %v1457_v2 = vsel %vm1396_vm3, %v2411_v10, 0.0 }
 0x322   : > { %v1420_v43 = vpop.xlane.xlu2 %1419 }
 0x323   : > { %v1428_v4 = vsub.f32 %v1393_v52, %v1420_v43 }
 0x325   : > { %v2413_v33 = vpop.eup %2412  ;;  %v1443_v28 = vmul.f32 1.442695, %v1428_v4 }
 0x326   : > { %2273 = vmatmul.msk.f32.vlgmr.msrb.gmra.mxu1 %vm1396_vm3, %v2413_v33  ;;  %v1454_v5 = vsel %vm1396_vm3, %v2413_v33, 0.0 }
 0x327   : > { %2414 = vpow2.f32 %v1443_v28  ;;  %1455 = vadd.xlane.f32.xlu0 %v1454_v5 }
 0x328   : > { %1458 = vadd.xlane.f32.xlu1 %v1457_v2 }
 0x32d   : > { %v2415_v20 = vpop.eup %2414 }
 0x32e   : > { %2277 = vmatmul.msk.f32.vlgmr.msra.gmra.mxu1 %vm1396_vm3, %v2415_v20  ;;  %v1466_v53 = vsel %vm1396_vm3, %v2415_v20, 0.0 }
 0x32f   : > { %1461 = vadd.xlane.f32.xlu0 %v1460_v13 }
 0x330   : > { %1467 = vadd.xlane.f32.xlu1 %v1466_v53 }
 0x386   : > { %v1447_v35 = vpop.xlane.xlu2 %1446 }
 0x387   : > { %2416 = vrcp.f32 %v1447_v35  ;;  %v1664_v48 = vand.u32 2147483648, %v1447_v35  ;;  %vm1658_vm6 = vweird.f32 %v1447_v35  ;;  %v1662_v26 = vand.u32 2147483647, %v1447_v35 }
 0x389   : > { %v1665_v21 = vor.u32 1.1754944e-38, %v1664_v48  ;;  %vm1663_vm10 = vcmp.eq.f32.partialorder %v1662_v26, 8.507059e+37 }
 0x38b   : > { %v1453_v49 = vpop.xlane.xlu0 %1452 }
 0x38c   : > { %2418 = vrcp.f32 %v1453_v49  ;;  %v1692_v32 = vand.u32 2147483648, %v1453_v49  ;;  %vm1686_vm8 = vweird.f32 %v1453_v49  ;;  %v1690_v52 = vand.u32 2147483647, %v1453_v49 }
 0x38d   : > { %v2417_v30 = vpop.eup %2416 }
 0x38e   : > { %v1654_v31 = vmul.f32 %v2417_v30, %v1447_v35  ;;  %v1450_v1 = vpop.xlane.xlu2 %1449  ;;  %vm1659_vm4 = vweird.f32 %v2417_v30  ;;  %v1693_v60 = vor.u32 1.1754944e-38, %v1692_v32  ;;  %vm1691_vm11 = vcmp.eq.f32.partialorder %v1690_v52, 8.507059e+37 }
 0x38f   : > { %2420 = vrcp.f32 %v1450_v1  ;;  %vm1660_vm7 = vmor %vm1658_vm6, %vm1659_vm4  ;;  %v1676_v27 = vand.u32 2147483647, %v1450_v1  ;;  %v1678_v18 = vand.u32 2147483648, %v1450_v1  ;;  %vm1672_vm13 = vweird.f32 %v1450_v1 }
 0x390   : > { %v1655_v16 = vsub.f32 1.0, %v1654_v31 }
 0x391   : > { %vm3422_vm14 = vcmp.eq.f32.partialorder %v1676_v27, 8.507059e+37  ;;  %v1679_v39 = vor.u32 1.1754944e-38, %v1678_v18 }
 0x392   : > { %v2419_v51 = vpop.eup %2418  ;;  %v1656_v42 = vmul.f32 %v2417_v30, %v1655_v16 }
 0x393   : > { %v1682_v9 = vmul.f32 %v2419_v51, %v1453_v49  ;;  %v3400_v50 = vpop.xlane.xlu1 %1464  ;;  %vm1687_vm5 = vweird.f32 %v2419_v51 }
 0x394   : > { %2422 = vrcp.f32 %v3400_v50  ;;  %v1657_v56 = vadd.f32 %v2417_v30, %v1656_v42  ;;  %vm1688_vm9 = vmor %vm1686_vm8, %vm1687_vm5  ;;  %v1746_v37 = vand.u32 2147483647, %v3400_v50  ;;  %v1748_v44 = vand.u32 2147483648, %v3400_v50  ;;  %v1535_v11 = vpop.f32.mrf.mxu0 }
 0x395   : > { %v3403_v36 = vpop.eup %2420  ;;  %v1683_v23 = vsub.f32 1.0, %v1682_v9  ;;  %v1489_v12 = vpop.f32.mrf.mxu2  ;;  %vm1742_vm15 = vweird.f32 %v3400_v50 }
 0x396   : > { %v1668_v41 = vmul.f32 %v3403_v36, %v1450_v1  ;;  %v1661_v54 = vsel %vm1660_vm7, %v2417_v30, %v1657_v56  ;;  %vm1673_vm12 = vweird.f32 %v3403_v36  ;;  %vm3427_vm4 = vcmp.eq.f32.partialorder %v1746_v37, 8.507059e+37 }
 0x397   : > { %v1684_v24 = vmul.f32 %v2419_v51, %v1683_v23  ;;  %v1666_v63 = vsel %vm1663_vm10, %v1665_v21, %v1661_v54  ;;  %vm3431_vm5 = vmor %vm1672_vm13, %vm1673_vm12  ;;  %v1749_v3 = vor.u32 1.1754944e-38, %v1748_v44 }
 0x398   : > { %v1669_v57 = vsub.f32 1.0, %v1668_v41  ;;  %v1765_v47 = vmul.f32 %v1666_v63, %v1489_v12 }
 0x399   : > { %v1685_v46 = vadd.f32 %v2419_v51, %v1684_v24 }
 0x39a   : > { %v3406_v40 = vpop.eup %2422  ;;  %v1670_v29 = vmul.f32 %v3403_v36, %v1669_v57  ;;  %v3414_v61 = vpop.xlane.xlu0 %1455  ;;  %v1775_v59 = vrot.slane %v1765_v47, 4 }
 0x39b   : > { %v1738_v0 = vmul.f32 %v3406_v40, %v3400_v50  ;;  %v1689_v15 = vsel %vm1688_vm9, %v2419_v51, %v1685_v46  ;;  %v3410_v17 = vpop.xlane.xlu1 %1458  ;;  %vm1743_vm6 = vweird.f32 %v3406_v40  ;;  %v1704_v49 = vand.u32 2147483647, %v3414_v61 }
 0x39c   : > { %2424 = vrcp.f32 %v3410_v17  ;;  %v1694_v19 = vsel %vm1691_vm11, %v1693_v60, %v1689_v15  ;;  %v1671_v62 = vadd.f32 %v3403_v36, %v1670_v29  ;;  %v1718_v33 = vand.u32 2147483647, %v3410_v17  ;;  %vm3458_vm7 = vmor %vm1742_vm15, %vm1743_vm6 }
 0x39d   : > { %v1739_v38 = vsub.f32 1.0, %v1738_v0  ;;  %2426 = vrcp.f32 %v3414_v61  ;;  %v1767_v14 = vmul.f32 %v1694_v19, %v1535_v11  ;;  %v1720_v20 = vand.u32 2147483648, %v3410_v17 }
 0x39e   : > { %v1675_v10 = vsel %vm3431_vm5, %v3403_v36, %v1671_v62  ;;  %v1706_v16 = vand.u32 2147483648, %v3414_v61  ;;  %vm1714_vm9 = vweird.f32 %v3410_v17  ;;  %v1512_v36 = vpop.f32.mrf.mxu3  ;;  %vm1700_vm11 = vweird.f32 %v3414_v61 }
 0x39f   : > { %v1740_v6 = vmul.f32 %v3406_v40, %v1739_v38  ;;  %v1773_v2 = vrot.slane %v1767_v14, 4  ;;  %v1776_v53 = vsel %vm452_vm1, %v1767_v14, %v1775_v59  ;;  %v1680_v30 = vsel %vm3422_vm14, %v1679_v39, %v1675_v10 }
 0x3a0   : > { %v3469_v50 = vperm.slane %v1776_v53, %v2863_v34  ;;  %v1766_v56 = vmul.f32 %v1680_v30, %v1512_v36  ;;  %vm1719_vm13 = vcmp.eq.f32.partialorder %v1718_v33, 8.507059e+37  ;;  %v1721_v41 = vor.u32 1.1754944e-38, %v1720_v20 }
 0x3a1   : > { %v1741_v4 = vadd.f32 %v3406_v40, %v1740_v6  ;;  %v1774_v9 = vsel %vm452_vm1, %v1773_v2, %v1765_v47  ;;  %vm1705_vm15 = vcmp.eq.f32.partialorder %v1704_v49, 8.507059e+37  ;;  %v1707_v32 = vor.u32 1.1754944e-38, %v1706_v16 }
 0x3a2   : > { %v2425_v22 = vpop.eup %2424  ;;  %v3443_v28 = vpop.xlane.xlu0 %1461  ;;  %v1780_v52 = vperm.slane %v1774_v9, %v2863_v34  ;;  %v1835_v15 = vrot.slane %v3469_v50, 4  ;;  %v1787_v38 = vrot.slane %v1766_v56, 4 }
 0x3a3   : > { %v2427_v45 = vpop.eup %2426  ;;  %v1710_v55 = vmul.f32 %v2425_v22, %v3410_v17  ;;  %2428 = vrcp.f32 %v3443_v28  ;;  %v3447_v13 = vpop.xlane.xlu1 %1467  ;;  %vm1715_vm8 = vweird.f32 %v2425_v22  ;;  %v1745_v51 = vsel %vm3458_vm7, %v3406_v40, %v1741_v4 }
 0x3a4   : > { %v1696_v43 = vmul.f32 %v2427_v45, %v3414_v61  ;;  %2430 = vrcp.f32 %v3447_v13  ;;  %vm1701_vm10 = vweird.f32 %v2427_v45  ;;  %vm1716_vm12 = vmor %vm1714_vm9, %vm1715_vm8  ;;  %v1750_v26 = vsel %vm3427_vm4, %v1749_v3, %v1745_v51  ;;  %v1581_v54 = vpop.f32.mrf.mxu2  ;;  %v1627_v17 = vpop.f32.mrf.mxu0 }
 0x3a5   : > { %v1711_v5 = vsub.f32 1.0, %v1710_v55  ;;  %vm1702_vm14 = vmor %vm1700_vm11, %vm1701_vm10  ;;  %v1558_v29 = vpop.f32.mrf.mxu1  ;;  %v1771_v19 = vmul.f32 %v1750_v26, %v1627_v17  ;;  %v1732_v18 = vand.u32 2147483647, %v3443_v28  ;;  %v1734_v37 = vand.u32 2147483648, %v3443_v28 }
 0x3a6   : > { %v1697_v35 = vsub.f32 1.0, %v1696_v43  ;;  %vm1728_vm5 = vweird.f32 %v3443_v28  ;;  %v1762_v25 = vand.u32 2147483648, %v3447_v13  ;;  %vm1756_vm9 = vweird.f32 %v3447_v13  ;;  %v1604_v53 = vpop.f32.mrf.mxu3 }
 0x3a7   : > { %v1712_v1 = vmul.f32 %v2425_v22, %v1711_v5  ;;  %v1797_v59 = vrot.slane %v1771_v19, 4  ;;  %v1735_v58 = vor.u32 1.1754944e-38, %v1734_v37  ;;  %vm1733_vm8 = vcmp.eq.f32.partialorder %v1732_v18, 8.507059e+37 }
 0x3a8   : > { %v1698_v42 = vmul.f32 %v2427_v45, %v1697_v35  ;;  %v1763_v2 = vor.u32 1.1754944e-38, %v1762_v25  ;;  %v1823_v5 = vrot.slane %v1780_v52, 4 }
 0x3a9   : > { %v1713_v23 = vadd.f32 %v2425_v22, %v1712_v1  ;;  %v2429_v24 = vpop.eup %2428 }
 0x3aa   : > { %v1699_v48 = vadd.f32 %v2427_v45, %v1698_v42  ;;  %v2431_v46 = vpop.eup %2430  ;;  %v1724_v21 = vmul.f32 %v2429_v24, %v3443_v28  ;;  %vm1729_vm4 = vweird.f32 %v2429_v24 }
 0x3ab   : > { %v1717_v57 = vsel %vm1716_vm12, %v2425_v22, %v1713_v23  ;;  %v1752_v63 = vmul.f32 %v2431_v46, %v3447_v13  ;;  %vm1757_vm6 = vweird.f32 %v2431_v46  ;;  %vm1730_vm7 = vmor %vm1728_vm5, %vm1729_vm4  ;;  %vm2027_vm12 = vcmask 97280  }
 0x3ac   : > { %v1722_v40 = vsel %vm1719_vm13, %v1721_v41, %v1717_v57  ;;  %v1703_v0 = vsel %vm1702_vm14, %v2427_v45, %v1699_v48  ;;  %v1725_v12 = vsub.f32 1.0, %v1724_v21  ;;  %v1760_v45 = vand.u32 2147483647, %v3447_v13  ;;  %vm1758_vm10 = vmor %vm1756_vm9, %vm1757_vm6 }
 0x3ad   : > { %v1769_v60 = vmul.f32 %v1722_v40, %v1581_v54  ;;  %v1708_v61 = vsel %vm1705_vm15, %v1707_v32, %v1703_v0  ;;  %v1753_v47 = vsub.f32 1.0, %v1752_v63  ;;  %v1650_v31 = vpop.f32.mrf.mxu1  ;;  %vm2029_vm13 = vcmask 130048  }
 0x3ae   : > { %v1768_v27 = vmul.f32 %v1708_v61, %v1558_v29  ;;  %v1726_v11 = vmul.f32 %v2429_v24, %v1725_v12  ;;  %vm1761_vm11 = vcmp.eq.f32.partialorder %v1760_v45, 8.507059e+37  ;;  %vm2033_vm14 = vcmask 195584  }
 0x3af   : > { %v1799_v44 = vrot.slane %v1769_v60, 4  ;;  %v1754_v22 = vmul.f32 %v2431_v46, %v1753_v47  ;;  %v1798_v20 = vsel %vm452_vm1, %v1797_v59, %v1769_v60  ;;  %vm2035_vm15 = vcmask 228352  }
 0x3b0   : > { %v1785_v62 = vrot.slane %v1768_v27, 4  ;;  %v1788_v6 = vsel %vm452_vm1, %v1768_v27, %v1787_v38  ;;  %v1727_v39 = vadd.f32 %v2429_v24, %v1726_v11  ;;  %v1804_v42 = vperm.slane %v1798_v20, %v2863_v34 }
 0x3b1   : > { %v1796_v14 = vperm.slane %v1788_v6, %v2863_v34  ;;  %v1755_v3 = vadd.f32 %v2431_v46, %v1754_v22  ;;  %v1800_v10 = vsel %vm452_vm1, %v1771_v19, %v1799_v44 }
 0x3b2   : > { %v1786_v7 = vsel %vm452_vm1, %v1785_v62, %v1766_v56  ;;  %v1731_v43 = vsel %vm1730_vm7, %v2429_v24, %v1727_v39  ;;  %v1808_v49 = vperm.slane %v1800_v10, %v2863_v34  ;;  %v1847_v54 = vrot.slane %v1804_v42, 4 }
 0x3b3   : > { %v1792_v55 = vperm.slane %v1786_v7, %v2863_v34  ;;  %v1736_v4 = vsel %vm1733_vm8, %v1735_v58, %v1731_v43  ;;  %v1833_v28 = vrot.slane %v1796_v14, 4  ;;  %v1759_v35 = vsel %vm1758_vm10, %v2431_v46, %v1755_v3 }
 0x3b4   : > { %v1836_v30 = vsel %vm452_vm1, %v1796_v14, %v1835_v15  ;;  %v1764_v1 = vsel %vm1761_vm11, %v1763_v2, %v1759_v35  ;;  %v1770_v16 = vmul.f32 %v1736_v4, %v1604_v53  ;;  %v1859_v48 = vrot.slane %v1808_v49, 4 }
 0x3b5   : > { %v1821_v33 = vrot.slane %v1792_v55, 4  ;;  %v1824_v13 = vsel %vm452_vm1, %v1792_v55, %v1823_v5  ;;  %v1772_v51 = vmul.f32 %v1764_v1, %v1650_v31  ;;  %v1834_v36 = vsel %vm452_vm1, %v1833_v28, %v3469_v50 }
 0x3b6   : > { %v1811_v23 = vrot.slane %v1770_v16, 4  ;;  %v1844_v56 = vperm.slane %v1836_v30, %v2900_v8  ;;  %v1832_v24 = vperm.slane %v1824_v13, %v2900_v8  ;;  %v1840_v32 = vperm.slane %v1834_v36, %v2900_v8 }
 0x3b7   : > { %v1822_v9 = vsel %vm452_vm1, %v1821_v33, %v1780_v52  ;;  %v1809_v41 = vrot.slane %v1772_v51, 4 }
 0x3b8   : > { %v1812_v26 = vsel %vm452_vm1, %v1772_v51, %v1811_v23  ;;  %v1828_v57 = vperm.slane %v1822_v9, %v2900_v8  ;;  %v1883_v40 = vrot.slane %v1844_v56, 4  ;;  %v1875_v15 = vrot.slane %v1832_v24, 4 }
 0x3b9   : > { %v1810_v46 = vsel %vm452_vm1, %v1809_v41, %v1770_v16  ;;  %v1820_v52 = vperm.slane %v1812_v26, %v2863_v34  ;;  %v1879_v61 = vrot.slane %v1840_v32, 4 }
 0x3ba   : > { %v1816_v50 = vperm.slane %v1810_v46, %v2863_v34  ;;  %v1871_v29 = vrot.slane %v1828_v57, 4 }
 0x3bb   : > { %v1857_v21 = vrot.slane %v1820_v52, 4  ;;  %v1860_v0 = vsel %vm452_vm1, %v1820_v52, %v1859_v48 }
 0x3bc   : > { %v1845_v17 = vrot.slane %v1816_v50, 4  ;;  %v1848_v60 = vsel %vm452_vm1, %v1816_v50, %v1847_v54  ;;  %v1868_v63 = vperm.slane %v1860_v0, %v2900_v8 }
 0x3bd   : > { %v1856_v38 = vperm.slane %v1848_v60, %v2900_v8  ;;  %v1858_v19 = vsel %vm452_vm1, %v1857_v21, %v1808_v49 }
 0x3be   : > { %v1846_v12 = vsel %vm452_vm1, %v1845_v17, %v1804_v42  ;;  %v1864_v27 = vperm.slane %v1858_v19, %v2900_v8  ;;  %v1881_v18 = vrot.slane %v1868_v63, 4  ;;  %v1884_v37 = vsel %vm452_vm1, %v1868_v63, %v1883_v40 }
 0x3bf   : > { %v1852_v47 = vperm.slane %v1846_v12, %v2900_v8  ;;  %v1873_v44 = vrot.slane %v1856_v38, 4  ;;  %v1876_v11 = vsel %vm452_vm1, %v1856_v38, %v1875_v15  ;;  %v1921_v62 = vrot.slane %v1884_v37, 4 }
 0x3c0   : > { %v1877_v6 = vrot.slane %v1864_v27, 4  ;;  %v1882_v14 = vsel %vm452_vm1, %v1881_v18, %v1844_v56  ;;  %v1897_v22 = vrot.slane %v1876_v11, 4  ;;  %v1880_v25 = vsel %vm452_vm1, %v1864_v27, %v1879_v61 }
 0x3c1   : > { %v1869_v39 = vrot.slane %v1852_v47, 4  ;;  %v1874_v7 = vsel %vm452_vm1, %v1873_v44, %v1832_v24  ;;  %v1872_v45 = vsel %vm452_vm1, %v1852_v47, %v1871_v29  ;;  %v1909_v59 = vrot.slane %v1882_v14, 4 }
 0x3c2   : > { %v1878_v58 = vsel %vm452_vm1, %v1877_v6, %v1840_v32  ;;  %v1885_v55 = vrot.slane %v1874_v7, 4  ;;  %v1898_v3 = vsel %vm452_vm1, %v1897_v22, %v1872_v45  ;;  %v1922_v10 = vsel %vm452_vm1, %v1921_v62, %v1880_v25 }
 0x3c3   : > { %v1870_v43 = vsel %vm452_vm1, %v1869_v39, %v1828_v57  ;;  %v1904_v4 = vperm.slane %v1898_v3, %v2863_v34  ;;  %v1910_v33 = vsel %vm452_vm1, %v1909_v59, %v1878_v58  ;;  %v1911_v28 = vrot.slane %v1878_v58, 4  ;;  %v2040_v58 = vld [vmem:[#allocation8 + $0x18] sm:$0xff]  ;;  %v2038_v3 = vld [vmem:[#allocation8 + $0x8] sm:$0xff] }
 0x3c4   : > { %v1886_v2 = vsel %vm452_vm1, %v1885_v55, %v1870_v43  ;;  %v1916_v5 = vperm.slane %v1910_v33, %v2863_v34  ;;  %v1923_v20 = vrot.slane %v1880_v25, 4  ;;  %v1928_v53 = vperm.slane %v1922_v10, %v2863_v34  ;;  %2060 = vmatpush.msra.mxu2 %v2040_v58  ;;  %v2039_v55 = vld [vmem:[#allocation8 + $0x10] sm:$0xff] }
 0x3c5   : > { %v1892_v35 = vperm.slane %v1886_v2, %v2863_v34  ;;  %v1933_v49 = vrot.slane %v1904_v4, 4  ;;  %v1887_v30 = vrot.slane %v1870_v43, 4  ;;  %v1899_v31 = vrot.slane %v1872_v45, 4 }
 0x3c6   : > { %v1957_v1 = vrot.slane %v1928_v53, 4  ;;  %v1912_v16 = vsel %vm452_vm1, %v1882_v14, %v1911_v28  ;;  %v1924_v13 = vsel %vm452_vm1, %v1884_v37, %v1923_v20  ;;  %v1959_v51 = vrot.slane %v1916_v5, 4  ;;  %2061 = vmatpush.msra.mxu2 %v2039_v55 }
 0x3c7   : > { %v1934_v42 = vsel %vm452_vm1, %v1933_v49, %v1892_v35  ;;  %v1888_v9 = vsel %vm452_vm1, %v1874_v7, %v1887_v30  ;;  %v1900_v36 = vsel %vm452_vm1, %v1876_v11, %v1899_v31  ;;  %v1920_v23 = vperm.slane %v1912_v16, %v2863_v34  ;;  %v2397_v16 = vld [vmem:[%s3618_s5] ss:$0 sm:$0xff] }
 0x3c8   : > { %v1940_v56 = vperm.slane %v1934_v42, %v2900_v8  ;;  %v1958_v41 = vsel %vm452_vm1, %v1957_v1, %v1916_v5  ;;  %v1896_v48 = vperm.slane %v1888_v9, %v2863_v34  ;;  %v1908_v24 = vperm.slane %v1900_v36, %v2863_v34  ;;  %2062 = vmatpush.msra.mxu2 %v2038_v3 }
 0x3c9   : > { %v1964_v26 = vperm.slane %v1958_v41, %v2900_v8  ;;  %v1932_v57 = vperm.slane %v1924_v13, %v2863_v34  ;;  %v1935_v32 = vrot.slane %v1892_v35, 4  ;;  %v1960_v54 = vsel %vm452_vm1, %v1928_v53, %v1959_v51  ;;  %v2068_v51 = vld [vmem:[%s346_s23] sm:$0xff]  ;;  %s2280_s23 = sshll.u32 %s2728_s12, 3  ;;  %s394_s12 = scalar_lea.vmem [#allocation10], %s2829_s9 }
 0x3ca   : > { %v1983_v46 = vrot.slane %v1940_v56, 4  ;;  %v1945_v52 = vrot.slane %v1908_v24, 4  ;;  %v1971_v0 = vrot.slane %v1920_v23, 4  ;;  %v1968_v38 = vperm.slane %v1960_v54, %v2900_v8  ;;  %s2121_s21 = scalar_lea.hbm %s3621_s8, %s2280_s23  ;;  %s2123_s22 = sshll.u32 %s394_s12, 4  ;;  %s2124_s22 = int_to_ptr.vmem [resolvable:$true] %s2123_s22 }
 0x3cb   : > { %v1981_v50 = vrot.slane %v1964_v26, 4  ;;  %v1969_v40 = vrot.slane %v1932_v57, 4  ;;  %v1936_v21 = vsel %vm452_vm1, %v1904_v4, %v1935_v32  ;;  %v1947_v12 = vrot.slane %v1896_v48, 4  ;;  %s2576_s9 = scalar_lea.hbm %s3621_s8, 16 }
 0x3cc   : > { %v1984_v15 = vsel %vm452_vm1, %v1964_v26, %v1983_v46  ;;  %v1946_v17 = vsel %vm452_vm1, %v1945_v52, %v1896_v48  ;;  %v1944_v60 = vperm.slane %v1936_v21, %v2900_v8  ;;  %v1972_v29 = vsel %vm452_vm1, %v1932_v57, %v1971_v0 }
 0x3cd   : > { %1998 = vrot.lane.b32.xlu2 %v1984_v15, %s2651_s2  ;;  %v1952_v34 = vperm.slane %v1946_v17, %v2900_v8  ;;  %v1970_v63 = vsel %vm452_vm1, %v1969_v40, %v1920_v23  ;;  %v1982_v27 = vsel %vm452_vm1, %v1981_v50, %v1940_v56  ;;  %v1980_v44 = vperm.slane %v1972_v29, %v2900_v8  ;;  %s2125_s2 = sshll.u32 %s2121_s21, 4  ;;  %s2126_s2 = int_to_ptr.hbm [resolvable:$true] %s2125_s2 }
 0x3ce   : > { %v1976_v61 = vperm.slane %v1970_v63, %v2900_v8  ;;  %v1987_v19 = vrot.slane %v1944_v60, 4  ;;  %v1948_v62 = vsel %vm452_vm1, %v1908_v24, %v1947_v12  ;;  %v1985_v25 = vrot.slane %v1968_v38, 4  ;;  %v2399_v12 = vld [vmem:[%s3620_s7] ss:$0 sm:$0xff] }
 0x3cf   : > { %v1991_v47 = vrot.slane %v1952_v34, 4  ;;  %v1993_v14 = vrot.slane %v1980_v44, 4  ;;  %v1956_v22 = vperm.slane %v1948_v62, %v2900_v8  ;;  %v2037_v8 = vld [vmem:[#allocation8] sm:$0xff]  ;;  %v2658_v23 = vmov 32.0  }
 0x3d0   : > { %v1989_v18 = vrot.slane %v1976_v61, 4  ;;  %v1988_v37 = vsel %vm452_vm1, %v1968_v38, %v1987_v19  ;;  %v1986_v7 = vsel %vm452_vm1, %v1985_v25, %v1944_v60  ;;  %2063 = vmatpush.msra.mxu2 %v2037_v8  ;;  %2432 = vrcp.f32 %v2658_v23 }
 0x3d1   : > { %2006 = vrot.lane.b32.xlu1 %v1988_v37, %s2652_s24  ;;  %v1992_v6 = vsel %vm452_vm1, %v1976_v61, %v1991_v47  ;;  %v1994_v39 = vsel %vm452_vm1, %v1993_v14, %v1956_v22  ;;  %v1995_v45 = vrot.slane %v1956_v22, 4  ;;  %v2398_v61 = vld [vmem:[%s3619_s6] ss:$0 sm:$0xff]  ;;  %s2111_s24 = scalar_lea.sflag [#allocation4], %s2826_s29 }
 0x3d2   : > { %v1990_v11 = vsel %vm452_vm1, %v1989_v18, %v1952_v34 }
 0x3d3   : > { %2010 = vrot.lane.b32.xlu0 %v1990_v11, %s2653_s17  ;;  %v1996_v59 = vsel %vm452_vm1, %v1980_v44, %v1995_v45  ;;  %vm2031_vm1 = vcmask 162816   ;;  %s2570_s17 = sshra.s32 %s2126_s2, 4  ;;  %s2571_s17 = int_to_ptr.hbm [resolvable:$true] %s2570_s17 }
 0x3d4   : > { %p2577_p7 = scmp.lt.s32.totalorder %s2571_s17, %s3621_s8 }
 0x3d5   : > { %2014 = vrot.lane.b32.xlu2 %v1992_v6, %s2654_s16  ;;  %s2572_s16 = scalar_lea.hbm %s2571_s17, 8 }
 0x3d6   : > { %v2433_v56 = vpop.eup %2432  ;;  %p2573_p1 = scmp.ne.s32.totalorder %s2571_s17, %s2572_s16  ;;  %p2578_p9 = scmp.lt.s32.totalorder %s2576_s9, %s2572_s16 }
 0x3d7   : > { %v2074_v41 = vmul.f32 32.0, %v2433_v56 }
 0x3d8   : > { %p2574_p3 = pnand %p2573_p1, %p2773_p4  ;;  %p2579_p8 = por %p2578_p9, %p2577_p7 }
 0x3d9   : > { %2018 = vrot.lane.b32.xlu1 %v1994_v39, %s2655_s30  ;;  %v2075_v48 = vsub.f32 1.0, %v2074_v41 }
 0x3da   : > { %p2575_p12 = pneg %p2574_p3 }
 0x3db   : > { %2002 = vrot.lane.b32.xlu0 %v1986_v7, %s2656_s13  ;;  %v2076_v24 = vmul.f32 %v2433_v56, %v2075_v48 }
 0x3dc   : > { %p2580_p10 = pnand %p2579_p8, %p2575_p12 }
 0x3dd   : > { %v2077_v26 = vadd.f32 %v2433_v56, %v2076_v24 }
 0x3e3   : > { %2022 = vrot.lane.b32.xlu0 %v1996_v59, %s2657_s11 }
 0x427   : > { %v1999_v43 = vpop.permute.xlu2 %1998 }
 0x428   : > { %v2025_v33 = vsel %vm1187_vm2, %v1982_v27, %v1999_v43  ;;  %vm2078_vm2 = vweird.f32 %v2433_v56 }
 0x429   : > { %v2079_v57 = vsel %vm2078_vm2, %v2433_v56, %v2077_v26 }
 0x42f   : > { %v2015_v53 = vpop.permute.xlu2 %2014 }
 0x443   : > { %v2007_v4 = vpop.permute.xlu1 %2006 }
 0x445   : > { %v2011_v10 = vpop.permute.xlu0 %2010 }
 0x44b   : > { %v2019_v49 = vpop.permute.xlu1 %2018 }
 0x44d   : > { %v2003_v28 = vpop.permute.xlu0 %2002 }
 0x44e   : > { %v2026_v2 = vsel %vm1396_vm3, %v2025_v33, %v2003_v28 }
 0x44f   : > { %v2028_v5 = vsel %vm2027_vm12, %v2026_v2, %v2007_v4 }
 0x450   : > { %v2030_v20 = vsel %vm2029_vm13, %v2028_v5, %v2011_v10 }
 0x451   : > { %v2032_v35 = vsel %vm2031_vm1, %v2030_v20, %v2015_v53 }
 0x452   : > { %v2034_v31 = vsel %vm2033_vm14, %v2032_v35, %v2019_v49 }
 0x455   : > { %v2023_v30 = vpop.permute.xlu0 %2022 }
 0x456   : > { %v2036_v1 = vsel %vm2035_vm15, %v2034_v31, %v2023_v30 }
 0x457   : > { %2278 = vmatmul.msk.f32.vlgmr.msra.gmra.mxu2 %vm404_vm0, %v2036_v1 }
 0x4da   : > { %v2065_v13 = vpop.f32.mrf.mxu2 }
 0x4db   : > { %v2066_v42 = vadd.f32 %v2397_v16, %v2065_v13 }
 0x4dd   : > { %v2069_v9 = vadd.f32 %v2068_v51, %v2066_v42 }
 0x4df   : > { %v2070_v36 = vsel %vm404_vm0, %v2069_v9, 0.0 }
 0x4e0   : > { %2071 = vadd.xlane.f32.xlu2 %v2070_v36 }
 0x553   : > { %v2072_v32 = vpop.xlane.xlu2 %2071 }
 0x554   : > { %v2080_v46 = vmul.f32 %v2079_v57, %v2072_v32 }
 0x556   : > { %v2081_v52 = vsub.f32 %v2069_v9, %v2080_v46 }
 0x558   : > { %v2082_v54 = vmul.f32 %v2081_v52, %v2081_v52 }
 0x55a   : > { %v2083_v50 = vsel %vm404_vm0, %v2082_v54, 0.0 }
 0x55b   : > { %2084 = vadd.xlane.f32.xlu1 %v2083_v50 }
 0x5ce   : > { %v2085_v40 = vpop.xlane.xlu1 %2084 }
 0x5cf   : > { %v2086_v21 = vmul.f32 %v2085_v40, %v2079_v57 }
 0x5d1   : > { %v2087_v0 = vadd.f32 1e-06, %v2086_v21 }
 0x5d3   : > { %2434 = vrsqrt.f32 %v2087_v0  ;;  %vm2094_vm4 = vweird.f32 %v2087_v0 }
 0x5d9   : > { %v2435_v15 = vpop.eup %2434 }
 0x5da   : > { %v2089_v17 = vmul.f32 %v2435_v15, %v2087_v0  ;;  %vm2095_vm3 = vweird.f32 %v2435_v15 }
 0x5db   : > { %vm2096_vm5 = vmor %vm2094_vm4, %vm2095_vm3 }
 0x5dc   : > { %v2090_v60 = vmul.f32 %v2435_v15, %v2089_v17 }
 0x5de   : > { %v2091_v34 = vmul.f32 0.5, %v2090_v60 }
 0x5e0   : > { %v2092_v63 = vsub.f32 1.5, %v2091_v34 }
 0x5e2   : > { %v2093_v29 = vmul.f32 %v2435_v15, %v2092_v63 }
 0x5e4   : > { %v2097_v38 = vsel %vm2096_vm5, %v2435_v15, %v2093_v29 }
 0x5e5   : > { %v2098_v19 = vmul.f32 %v2097_v38, %v2081_v52 }
 0x5e7   : > { %v2103_v27 = vmul.f32 %v2398_v61, %v2098_v19 }
 0x5e9   : > { %v2108_v18 = vadd.f32 %v2399_v12, %v2103_v27 }
 0x5eb   : > { %2109 = vst.msk [vmem:[%s394_s12] sm:$0xff] %vm404_vm0, %v2108_v18 }
 0x5ec   : > { %2583 = shalt.err (!%p2580_p10)
}
 0x5ed   : > { %2295 = dma.vmem_to_hbm [thread:$0]  (%p2773_p4), %s2124_s22, 128, %s2126_s2, %s2111_s24  }
 0x5ee PF: > { %s3651_s26 = sld [smem:[#allocation17_spill]]  ;;  %s2137_s23 = sand.u32 1, %s2622_s27  }
 0x5ef   : > { %s2138_s4 = scalar_lea.sflag [#allocation4], %s2137_s23 }
 0x5f4   : > { %p3652_p11 = scmp.ge.s32.totalorder %s3651_s26, 2 }
 0x5f6   : > { %p2312_p5 = pnand %p3652_p11, %p2777_p6 }
 0x5f8   : > { %p2313_p13 = pneg %p2312_p5 }
 0x5fa   : > { %2617 = dma.done.wait (%p2313_p13), %s2138_s4, 128  }
 0x5fb   : > { %2619 = vsyncadd (%p2313_p13), %s2138_s4, 4294967168  ;;  %s3653_s30 = sld [smem:[#allocation18_spill]]  ;;  %s3656_s27 = smov %s2626_s28 }
 0x5fc   : > { %s3654_s14 = sld [smem:[#allocation16_spill]] }
 0x5fd   : > { %s3655_s29 = sld [smem:[#allocation19_spill]] }
 0x601   : > { %p25_p0 = scmp.ge.s32.totalorder %s3653_s30, 4  }
 0x602   : > { %s3657_s28 = smov %s3654_s14 }
 0x603   :  { %27 = sbr.rel (!%p25_p0) target bundleno = 11 (0xb), region = 118 }
 0x608   :  { %2144 = vsyncpa [#allocation3], 1 }
 0x609   :  { %2146 = vsyncpa [#allocation3 + $0x1], 1 }
 0x60a   :  { %2147 = vsyncpa [#allocation6], 1 }
 0x60b   :  { %2149 = vsyncpa [#allocation6 + $0x1], 1 }
 0x60c   :  { %2150 = vsyncpa [#allocation9], 1 }
 0x60d   :  { %2151 = vsyncpa [#allocation4], 1 }
 0x60e   :  { %2153 = vsyncpa [#allocation4 + $0x1], 1 }

</bundles_post_ra>
